<compile_context>
chip_gen: v7x
topology: tpu7x:2x2x1
jax: 0.10.0
libtpu: 0.0.40
codegen_flags: <defaults>
</compile_context>

<pallas_src>
import functools
import math

import jax
import jax.numpy as jnp
import numpy as np
from jax import lax
from jax.experimental import pallas as pl
from jax.experimental.pallas import tpu as pltpu

_LN_EPS = 1e-5        # torch.nn.LayerNorm default
_MASK_NEG = -1e30     # finite "minus infinity": avoids NaN for fully-masked rows


def _layernorm(v, g, b, eps=_LN_EPS):
    mu = jnp.mean(v, axis=-1, keepdims=True)
    var = jnp.mean((v - mu) ** 2, axis=-1, keepdims=True)
    return (v - mu) * lax.rsqrt(var + eps) * g + b


def _gelu_exact(x):
    # torch.nn.functional.gelu default (erf-based, exact), computed in f32.
    return 0.5 * x * (1.0 + lax.erf(x * (1.0 / math.sqrt(2.0))))


# ---------------------------------------------------------------------------
# Kernel 0: LayerNorm-1 + fused QKV projection (rows = batch*seq flattened).
# ---------------------------------------------------------------------------
def _qkv_kernel(x_ref, ln1g_ref, ln1b_ref, wq_ref, wk_ref, wv_ref,
                q_ref, k_ref, v_ref):
    xn = _layernorm(x_ref[...], ln1g_ref[...], ln1b_ref[...]).astype(jnp.bfloat16)
    # 1/sqrt(head_dim) is already folded into wq in the wrapper.
    q_ref[...] = jnp.dot(xn, wq_ref[...],
                         preferred_element_type=jnp.float32).astype(jnp.bfloat16)
    k_ref[...] = jnp.dot(xn, wk_ref[...],
                         preferred_element_type=jnp.float32).astype(jnp.bfloat16)
    v_ref[...] = jnp.dot(xn, wv_ref[...],
                         preferred_element_type=jnp.float32).astype(jnp.bfloat16)


# ---------------------------------------------------------------------------
# Kernel 1: multi-head self-attention (per head-group) + output proj + residual.
# ---------------------------------------------------------------------------
def _attn_kernel(x_ref, q_ref, k_ref, v_ref, bias_ref, wo_ref, bo_ref,
                 out_ref, acc_sc, *, G, hd):
    g = pl.program_id(2)

    @pl.when(g == 0)
    def _init():
        acc_sc[...] = jnp.zeros_like(acc_sc)

    bias = bias_ref[0]                               # (1, S) additive mask bias

    # Static unroll over the G heads of this group (group block is lane-dense;
    # per-head slices are static and overlap the MXU work).
    for h in range(G):
        lo = h * hd
        qh = q_ref[0, :, lo:lo + hd]                 # (tq, hd) bf16, pre-scaled
        kh = k_ref[0, :, lo:lo + hd]                 # (S,  hd) bf16
        vh = v_ref[0, :, lo:lo + hd]                 # (S,  hd) bf16

        # scores (tq, S): contract over head_dim, add the additive mask bias.
        s = lax.dot_general(qh, kh, (((1,), (1,)), ((), ())),
                            preferred_element_type=jnp.float32)
        s = s + bias

        # softmax in f32; divide goes to the EUP via approximate reciprocal.
        s_max = jnp.max(s, axis=-1, keepdims=True)
        p = jnp.exp(s - s_max)
        p = p * pl.reciprocal(jnp.sum(p, axis=-1, keepdims=True), approx=True)

        ctx = jnp.dot(p.astype(jnp.bfloat16), vh,
                      preferred_element_type=jnp.float32)            # (tq, hd)
        # This head's rows of the output projection; accumulate over heads/groups.
        acc_sc[...] += jnp.dot(ctx.astype(jnp.bfloat16),
                               wo_ref[0, lo:lo + hd, :],
                               preferred_element_type=jnp.float32)   # (tq, E)

    @pl.when(g == pl.num_programs(2) - 1)
    def _finalize():
        out_ref[0] = (x_ref[0] + acc_sc[...] + bo_ref[...]).astype(out_ref.dtype)


# ---------------------------------------------------------------------------
# Kernel 2: pre-LN FFN + residual (rows = batch*seq flattened).
# ---------------------------------------------------------------------------
def _ffn_kernel(x1_ref, ln2g_ref, ln2b_ref, w1_ref, b1_ref, w2_ref, b2_ref,
                out_ref, xn2_sc, acc_sc):
    m = pl.program_id(1)

    @pl.when(m == 0)
    def _init():
        xn2_sc[...] = _layernorm(
            x1_ref[...], ln2g_ref[...], ln2b_ref[...]).astype(jnp.bfloat16)
        acc_sc[...] = jnp.zeros_like(acc_sc)

    hid = jnp.dot(xn2_sc[...], w1_ref[...],
                  preferred_element_type=jnp.float32) + b1_ref[...]
    hid = _gelu_exact(hid)                                   # GELU in f32
    acc_sc[...] += jnp.dot(hid.astype(jnp.bfloat16), w2_ref[...],
                           preferred_element_type=jnp.float32)

    @pl.when(m == pl.num_programs(1) - 1)
    def _finalize():
        out_ref[...] = (x1_ref[...] + acc_sc[...] + b2_ref[...]).astype(out_ref.dtype)


# ---------------------------------------------------------------------------
# Wrappers.
# ---------------------------------------------------------------------------
def _pick_block(total, target, align):
    """Largest `align`-aligned block <= target that divides `total`
    (falls back to the full extent, which is always a legal block)."""
    if total <= target:
        return total
    b = (min(target, total) // align) * align
    while b >= align:
        if total % b == 0:
            return b
        b -= align
    return total


def _head_group(num_heads, head_dim):
    """Group size G so G*head_dim is a lane-dense multiple of 128 (prefer 256);
    fall back to all heads (width == E, always a legal full-dim block)."""
    for width in (256, 128):
        if width % head_dim == 0:
            g = width // head_dim
            if g <= num_heads and num_heads % g == 0:
                return g
    return num_heads


def _vmem_limit(block_bytes, scratch_bytes):
    # Generation-aware cap: 75% of the physical per-core VMEM (≈48 MiB on v7x,
    # ≈96 MiB on v5e/v6e) leaves room for Mosaic internal temporaries.
    try:
        cap = int(getattr(pltpu.get_tpu_info(), "vmem_capacity_bytes", 128 * 2 ** 20))
    except Exception:  # pragma: no cover - defensive, e.g. interpret mode
        cap = 128 * 2 ** 20
    cap = (cap * 3) // 4
    need = 2 * block_bytes + scratch_bytes          # pipelined blocks double-buffer
    return int(max(16 * 2 ** 20, min(cap, 2 * need)))


def _qkv_project(x2d, params, wq_s, wk, wv, *, tr0):
    R, E = x2d.shape
    n_r = R // tr0
    const = lambda shape: pl.BlockSpec(shape, lambda r: (0,) * len(shape))

    block_bytes = (tr0 * E * 4 + 2 * E * 4 + 3 * E * E * 2 + 3 * tr0 * E * 2)

    q, k, v = pl.pallas_call(
        _qkv_kernel,
        out_shape=[jax.ShapeDtypeStruct((R, E), jnp.bfloat16)] * 3,
        grid=(n_r,),
        in_specs=[
            pl.BlockSpec((tr0, E), lambda r: (r, 0)),      # x rows (f32)
            const((1, E)), const((1, E)),                  # ln1 gamma / beta
            const((E, E)), const((E, E)), const((E, E)),   # Wq*scale, Wk, Wv (bf16)
        ],
        out_specs=[pl.BlockSpec((tr0, E), lambda r: (r, 0))] * 3,
        compiler_params=pltpu.CompilerParams(
            dimension_semantics=("parallel",),
            vmem_limit_bytes=_vmem_limit(block_bytes, 0),
        ),
    )(x2d, params["ln1_g"], params["ln1_b"], wq_s, wk, wv)
    return q, k, v


def _attention(x, q, k, v, bias, wo3, bo, *, tq, G, hd):
    B, S, E = x.shape
    GW = G * hd
    n_hg = wo3.shape[0]
    n_q = S // tq

    block_bytes = (tq * E * 4 + tq * GW * 2 + 2 * S * GW * 2 + S * 4
                   + GW * E * 2 + E * 4 + tq * E * 4)
    scratch_bytes = tq * E * 4

    return pl.pallas_call(
        functools.partial(_attn_kernel, G=G, hd=hd),
        out_shape=jax.ShapeDtypeStruct((B, S, E), jnp.float32),
        grid=(B, n_q, n_hg),
        in_specs=[
            pl.BlockSpec((1, tq, E), lambda b, i, g: (b, i, 0)),    # x residual rows
            pl.BlockSpec((1, tq, GW), lambda b, i, g: (b, i, g)),   # q group slice
            pl.BlockSpec((1, S, GW), lambda b, i, g: (b, 0, g)),    # k group slice
            pl.BlockSpec((1, S, GW), lambda b, i, g: (b, 0, g)),    # v group slice
            pl.BlockSpec((1, 1, S), lambda b, i, g: (b, 0, 0)),     # additive mask bias
            pl.BlockSpec((1, GW, E), lambda b, i, g: (g, 0, 0)),    # Wo rows for group
            pl.BlockSpec((1, E), lambda b, i, g: (0, 0)),           # bo
        ],
        out_specs=pl.BlockSpec((1, tq, E), lambda b, i, g: (b, i, 0)),
        scratch_shapes=[pltpu.VMEM((tq, E), jnp.float32)],          # head-group acc
        compiler_params=pltpu.CompilerParams(
            dimension_semantics=("parallel", "parallel", "arbitrary"),
            vmem_limit_bytes=_vmem_limit(block_bytes, scratch_bytes),
        ),
    )(x, q, k, v, bias, wo3, bo)


def _ffn(x1, w1, w2, params, *, tr, tm):
    B, S, E = x1.shape
    M = w1.shape[1]
    R = B * S
    n_r, n_m = R // tr, M // tm

    const = lambda shape: pl.BlockSpec(shape, lambda r, m: (0,) * len(shape))

    block_bytes = (tr * E * 4 + 2 * E * 4 + E * tm * 2 + tm * 4
                   + tm * E * 2 + E * 4 + tr * E * 4)
    scratch_bytes = tr * E * 2 + tr * E * 4

    out = pl.pallas_call(
        _ffn_kernel,
        out_shape=jax.ShapeDtypeStruct((R, E), jnp.float32),
        grid=(n_r, n_m),
        in_specs=[
            pl.BlockSpec((tr, E), lambda r, m: (r, 0)),    # x1 rows
            const((1, E)), const((1, E)),                  # ln2 gamma / beta
            pl.BlockSpec((E, tm), lambda r, m: (0, m)),    # W1 column tile
            pl.BlockSpec((1, tm), lambda r, m: (0, m)),    # b1 tile
            pl.BlockSpec((tm, E), lambda r, m: (m, 0)),    # W2 row tile
            const((1, E)),                                 # b2
        ],
        out_specs=pl.BlockSpec((tr, E), lambda r, m: (r, 0)),
        scratch_shapes=[
            pltpu.VMEM((tr, E), jnp.bfloat16),   # LN2(x1) cache
            pltpu.VMEM((tr, E), jnp.float32),    # FFN accumulator
        ],
        compiler_params=pltpu.CompilerParams(
            dimension_semantics=("parallel", "arbitrary"),
            vmem_limit_bytes=_vmem_limit(block_bytes, scratch_bytes),
        ),
    )(x1.reshape(R, E),
      params["ln2_g"], params["ln2_b"], w1, params["b1"], w2, params["b2"])
    return out.reshape(B, S, E)


def encoder_block(x, mask, params, num_heads, *, tq=None, tm=None, tr=None,
                  tr_qkv=None):
    """x: (B, S, E) f32; mask: (B, S) with 1 = keep, 0 = masked key position."""
    B, S, E = x.shape
    M = params["w1"].shape[1]
    assert E % num_heads == 0
    hd = E // num_heads
    R = B * S

    G = _head_group(num_heads, hd)
    GW = G * hd
    n_hg = num_heads // G

    # 128-aligned row/query blocks, 256-aligned mlp tiles (lane-dense stores,
    # full MXU passes); fall back to the full extent at small shapes.
    tq = tq if tq is not None else _pick_block(S, 256, 128)
    tm = tm if tm is not None else _pick_block(M, 512, 256)
    tr = tr if tr is not None else _pick_block(R, 512, 128)
    tr_qkv = tr_qkv if tr_qkv is not None else _pick_block(R, 512, 128)
    assert S % tq == 0 and M % tm == 0 and R % tr == 0 and R % tr_qkv == 0

    # Additive mask bias computed once: 0 where kept, -1e30 where masked.
    bias = jnp.where(mask.reshape(B, 1, S) == 0, _MASK_NEG, 0.0).astype(jnp.float32)

    scale = 1.0 / math.sqrt(hd)
    wq_s = (params["wq"] * scale).astype(jnp.bfloat16)   # fold 1/sqrt(hd) into Wq
    wk = params["wk"].astype(jnp.bfloat16)
    wv = params["wv"].astype(jnp.bfloat16)
    wo3 = params["wo"].astype(jnp.bfloat16).reshape(n_hg, GW, E)
    w1 = params["w1"].astype(jnp.bfloat16)
    w2 = params["w2"].astype(jnp.bfloat16)

    xf = x.astype(jnp.float32)

    # Kernel 0: LN1 + QKV projection once per row (bf16 activations in HBM).
    q2d, k2d, v2d = _qkv_project(xf.reshape(R, E), params, wq_s, wk, wv, tr0=tr_qkv)
    q = q2d.reshape(B, S, E)
    k = k2d.reshape(B, S, E)
    v = v2d.reshape(B, S, E)

    # Kernel 1: attention over head groups + output projection + residual 1.
    x1 = _attention(xf, q, k, v, bias, wo3, params["bo"], tq=tq, G=G, hd=hd)

    # Kernel 2: LN2 + FFN + residual 2.
    return _ffn(x1, w1, w2, params, tr=tr, tm=tm)


# ---------------------------------------------------------------------------
# Pure-JAX reference and test.
# ---------------------------------------------------------------------------
def encoder_block_ref(x, mask, params, num_heads):
    """Pure-JAX f32 reference matching the PyTorch forward (eval mode)."""
    B, S, E = x.shape
    hd = E // num_heads
    mask4 = mask.reshape(B, 1, 1, S)

    xn = _layernorm(x, params["ln1_g"], params["ln1_b"])
    q = (xn @ params["wq"]).reshape(B, S, num_heads, hd).transpose(0, 2, 1, 3)
    k = (xn @ params["wk"]).reshape(B, S, num_heads, hd).transpose(0, 2, 1, 3)
    v = (xn @ params["wv"]).reshape(B, S, num_heads, hd).transpose(0, 2, 1, 3)
    s = jnp.einsum("bhqd,bhkd->bhqk", q, k) / math.sqrt(hd)
    s = jnp.where(mask4 == 0, _MASK_NEG, s)
    p = jax.nn.softmax(s, axis=-1)
    ctx = jnp.einsum("bhqk,bhkd->bhqd", p, v).transpose(0, 2, 1, 3).reshape(B, S, E)
    x1 = x + ctx @ params["wo"] + params["bo"]

    xn2 = _layernorm(x1, params["ln2_g"], params["ln2_b"])
    h = _gelu_exact(xn2 @ params["w1"] + params["b1"])
    return x1 + h @ params["w2"] + params["b2"]


def init_params(key, embedding_dim, mlp_dim):
    ks = jax.random.split(key, 8)
    scale = 0.05
    E, M = embedding_dim, mlp_dim
    return {
        "ln1_g": jnp.ones((1, E), jnp.float32),
        "ln1_b": jnp.zeros((1, E), jnp.float32),
        "wq": scale * jax.random.normal(ks[0], (E, E), jnp.float32),
        "wk": scale * jax.random.normal(ks[1], (E, E), jnp.float32),
        "wv": scale * jax.random.normal(ks[2], (E, E), jnp.float32),
        "wo": scale * jax.random.normal(ks[3], (E, E), jnp.float32),
        "bo": scale * jax.random.normal(ks[4], (1, E), jnp.float32),
        "ln2_g": jnp.ones((1, E), jnp.float32),
        "ln2_b": jnp.zeros((1, E), jnp.float32),
        "w1": scale * jax.random.normal(ks[5], (E, M), jnp.float32),
        "b1": scale * jax.random.normal(ks[6], (1, M), jnp.float32),
        "w2": scale * jax.random.normal(ks[7], (M, E), jnp.float32),
        "b2": jnp.zeros((1, E), jnp.float32),
    }


if __name__ == "__main__":
    # Small but (8, 128)-aligned shapes; chosen so every grid axis takes >1 step:
    # head_dim = 64 -> head-group width 256 -> 2 head groups; 2 q-blocks; 2 FFN
    # row-blocks; 4 mlp tiles.
    B, S, E, M, H = 2, 32, 512, 1024, 8

    key = jax.random.PRNGKey(0)
    kx, kp = jax.random.split(key)
    x = jax.random.normal(kx, (B, S, E), jnp.float32)
    # padding mask: batch 0 keeps all 32 keys, batch 1 keeps the first 23
    lengths = jnp.array([32, 23])
    mask = (jnp.arange(S)[None, :] < lengths[:, None]).astype(jnp.float32)   # (B, S)
    params = init_params(kp, E, M)

    out = encoder_block(x, mask, params, num_heads=H, tq=16, tm=256, tr=32)
    out = jax.block_until_ready(out)

    ref = encoder_block_ref(x, mask, params, num_heads=H)
    # bf16 MXU inputs / bf16 q,k,v activations vs f32 reference -> loosened tolerance.
    np.testing.assert_allclose(np.asarray(out), np.asarray(ref), rtol=5e-2, atol=5e-2)

    print("KERNEL_OK")
</pallas_src>

<mosaic_0001>
module attributes {stable_mosaic.version = 11 : i64} {
  func.func @_qkv_kernel(%arg0: i32, %arg1: memref<64x512xf32, #tpu.memory_space<vmem>>, %arg2: memref<1x512xf32, #tpu.memory_space<vmem>>, %arg3: memref<1x512xf32, #tpu.memory_space<vmem>>, %arg4: memref<512x512xbf16, #tpu.memory_space<vmem>>, %arg5: memref<512x512xbf16, #tpu.memory_space<vmem>>, %arg6: memref<512x512xbf16, #tpu.memory_space<vmem>>, %arg7: memref<64x512xbf16, #tpu.memory_space<vmem>>, %arg8: memref<64x512xbf16, #tpu.memory_space<vmem>>, %arg9: memref<64x512xbf16, #tpu.memory_space<vmem>>) attributes {dimension_semantics = [#tpu.dimension_semantics<parallel>], iteration_bounds = array<i64: 1>, scalar_prefetch = 0 : i64, scratch_operands = 0 : i64, tpu.core_type = #tpu.core_type<tc>, window_params = [{transform_indices = @transform_0, window_bounds = array<i64: 64, 512>}, {pipeline_mode = #tpu.pipeline_mode<synchronous>, transform_indices = @transform_1, window_bounds = array<i64: 1, 512>}, {pipeline_mode = #tpu.pipeline_mode<synchronous>, transform_indices = @transform_2, window_bounds = array<i64: 1, 512>}, {pipeline_mode = #tpu.pipeline_mode<synchronous>, transform_indices = @transform_3, window_bounds = array<i64: 512, 512>}, {pipeline_mode = #tpu.pipeline_mode<synchronous>, transform_indices = @transform_4, window_bounds = array<i64: 512, 512>}, {pipeline_mode = #tpu.pipeline_mode<synchronous>, transform_indices = @transform_5, window_bounds = array<i64: 512, 512>}, {transform_indices = @transform_6, window_bounds = array<i64: 64, 512>}, {transform_indices = @transform_7, window_bounds = array<i64: 64, 512>}, {transform_indices = @transform_8, window_bounds = array<i64: 64, 512>}]} {
    %c0 = arith.constant 0 : index
    %c0_0 = arith.constant 0 : index
    %0 = vector.load %arg1[%c0, %c0_0] : memref<64x512xf32, #tpu.memory_space<vmem>>, vector<64x512xf32>
    %c0_1 = arith.constant 0 : index
    %c0_2 = arith.constant 0 : index
    %1 = vector.load %arg2[%c0_1, %c0_2] : memref<1x512xf32, #tpu.memory_space<vmem>>, vector<1x512xf32>
    %c0_3 = arith.constant 0 : index
    %c0_4 = arith.constant 0 : index
    %2 = vector.load %arg3[%c0_3, %c0_4] : memref<1x512xf32, #tpu.memory_space<vmem>>, vector<1x512xf32>
    %cst = arith.constant dense<0.000000e+00> : vector<64xf32>
    %3 = vector.multi_reduction <add>, %0, %cst [1] : vector<64x512xf32> to vector<64xf32>
    %4 = vector.shape_cast %3 : vector<64xf32> to vector<64x1xf32>
    %cst_5 = arith.constant 5.120000e+02 : f32
    %5 = vector.broadcast %cst_5 : f32 to vector<64x1xf32>
    %6 = arith.divf %4, %5 : vector<64x1xf32>
    %7 = vector.broadcast %6 : vector<64x1xf32> to vector<64x512xf32>
    %8 = arith.subf %0, %7 : vector<64x512xf32>
    %9 = arith.mulf %8, %8 : vector<64x512xf32>
    %cst_6 = arith.constant dense<0.000000e+00> : vector<64xf32>
    %10 = vector.multi_reduction <add>, %9, %cst_6 [1] : vector<64x512xf32> to vector<64xf32>
    %11 = vector.shape_cast %10 : vector<64xf32> to vector<64x1xf32>
    %cst_7 = arith.constant 5.120000e+02 : f32
    %12 = vector.broadcast %cst_7 : f32 to vector<64x1xf32>
    %13 = arith.divf %11, %12 : vector<64x1xf32>
    %14 = vector.broadcast %6 : vector<64x1xf32> to vector<64x512xf32>
    %15 = arith.subf %0, %14 : vector<64x512xf32>
    %cst_8 = arith.constant 9.99999974E-6 : f32
    %16 = vector.broadcast %cst_8 : f32 to vector<64x1xf32>
    %17 = arith.addf %13, %16 : vector<64x1xf32>
    %18 = math.rsqrt %17 : vector<64x1xf32>
    %19 = vector.broadcast %18 : vector<64x1xf32> to vector<64x512xf32>
    %20 = arith.mulf %15, %19 : vector<64x512xf32>
    %21 = vector.broadcast %1 : vector<1x512xf32> to vector<64x512xf32>
    %22 = arith.mulf %20, %21 : vector<64x512xf32>
    %23 = vector.broadcast %2 : vector<1x512xf32> to vector<64x512xf32>
    %24 = arith.addf %22, %23 : vector<64x512xf32>
    %25 = arith.truncf %24 : vector<64x512xf32> to vector<64x512xbf16>
    %c0_9 = arith.constant 0 : index
    %c0_10 = arith.constant 0 : index
    %26 = vector.load %arg4[%c0_9, %c0_10] : memref<512x512xbf16, #tpu.memory_space<vmem>>, vector<512x512xbf16>
    %cst_11 = arith.constant dense<0.000000e+00> : vector<64x512xf32>
    %27 = tpu.matmul %25, %26, %cst_11 {dimension_numbers = #tpu.dot_dimension_numbers<[1], [0], [0], [1], [0, 0, 1, 1], [], []>} : vector<64x512xbf16>, vector<512x512xbf16>, vector<64x512xf32> -> vector<64x512xf32>
    %28 = arith.truncf %27 : vector<64x512xf32> to vector<64x512xbf16>
    %c0_12 = arith.constant 0 : index
    %c0_13 = arith.constant 0 : index
    %29 = vector.load %arg7[%c0_12, %c0_13] : memref<64x512xbf16, #tpu.memory_space<vmem>>, vector<64x512xbf16>
    tpu.vector_store %arg7[%c0_12, %c0_13], %28 {strides = array<i32>} : memref<64x512xbf16, #tpu.memory_space<vmem>>, vector<64x512xbf16>,
    %c0_14 = arith.constant 0 : index
    %c0_15 = arith.constant 0 : index
    %30 = vector.load %arg5[%c0_14, %c0_15] : memref<512x512xbf16, #tpu.memory_space<vmem>>, vector<512x512xbf16>
    %cst_16 = arith.constant dense<0.000000e+00> : vector<64x512xf32>
    %31 = tpu.matmul %25, %30, %cst_16 {dimension_numbers = #tpu.dot_dimension_numbers<[1], [0], [0], [1], [0, 0, 1, 1], [], []>} : vector<64x512xbf16>, vector<512x512xbf16>, vector<64x512xf32> -> vector<64x512xf32>
    %32 = arith.truncf %31 : vector<64x512xf32> to vector<64x512xbf16>
    %c0_17 = arith.constant 0 : index
    %c0_18 = arith.constant 0 : index
    %33 = vector.load %arg8[%c0_17, %c0_18] : memref<64x512xbf16, #tpu.memory_space<vmem>>, vector<64x512xbf16>
    tpu.vector_store %arg8[%c0_17, %c0_18], %32 {strides = array<i32>} : memref<64x512xbf16, #tpu.memory_space<vmem>>, vector<64x512xbf16>,
    %c0_19 = arith.constant 0 : index
    %c0_20 = arith.constant 0 : index
    %34 = vector.load %arg6[%c0_19, %c0_20] : memref<512x512xbf16, #tpu.memory_space<vmem>>, vector<512x512xbf16>
    %cst_21 = arith.constant dense<0.000000e+00> : vector<64x512xf32>
    %35 = tpu.matmul %25, %34, %cst_21 {dimension_numbers = #tpu.dot_dimension_numbers<[1], [0], [0], [1], [0, 0, 1, 1], [], []>} : vector<64x512xbf16>, vector<512x512xbf16>, vector<64x512xf32> -> vector<64x512xf32>
    %36 = arith.truncf %35 : vector<64x512xf32> to vector<64x512xbf16>
    %c0_22 = arith.constant 0 : index
    %c0_23 = arith.constant 0 : index
    %37 = vector.load %arg9[%c0_22, %c0_23] : memref<64x512xbf16, #tpu.memory_space<vmem>>, vector<64x512xbf16>
    tpu.vector_store %arg9[%c0_22, %c0_23], %36 {strides = array<i32>} : memref<64x512xbf16, #tpu.memory_space<vmem>>, vector<64x512xbf16>,
    return
  }
  func.func @transform_0(%arg0: i32) -> (i32, i32) {
    %c0_i32 = arith.constant 0 : i32
    %c0_i32_0 = arith.constant 0 : i32
    return %arg0, %c0_i32 : i32, i32
  }
  func.func @transform_1(%arg0: i32) -> (i32, i32) {
    %c0_i32 = arith.constant 0 : i32
    %c0_i32_0 = arith.constant 0 : i32
    %c0_i32_1 = arith.constant 0 : i32
    return %c0_i32, %c0_i32_0 : i32, i32
  }
  func.func @transform_2(%arg0: i32) -> (i32, i32) {
    %c0_i32 = arith.constant 0 : i32
    %c0_i32_0 = arith.constant 0 : i32
    %c0_i32_1 = arith.constant 0 : i32
    return %c0_i32, %c0_i32_0 : i32, i32
  }
  func.func @transform_3(%arg0: i32) -> (i32, i32) {
    %c0_i32 = arith.constant 0 : i32
    %c0_i32_0 = arith.constant 0 : i32
    %c0_i32_1 = arith.constant 0 : i32
    return %c0_i32, %c0_i32_0 : i32, i32
  }
  func.func @transform_4(%arg0: i32) -> (i32, i32) {
    %c0_i32 = arith.constant 0 : i32
    %c0_i32_0 = arith.constant 0 : i32
    %c0_i32_1 = arith.constant 0 : i32
    return %c0_i32, %c0_i32_0 : i32, i32
  }
  func.func @transform_5(%arg0: i32) -> (i32, i32) {
    %c0_i32 = arith.constant 0 : i32
    %c0_i32_0 = arith.constant 0 : i32
    %c0_i32_1 = arith.constant 0 : i32
    return %c0_i32, %c0_i32_0 : i32, i32
  }
  func.func @transform_6(%arg0: i32) -> (i32, i32) {
    %c0_i32 = arith.constant 0 : i32
    %c0_i32_0 = arith.constant 0 : i32
    return %arg0, %c0_i32 : i32, i32
  }
  func.func @transform_7(%arg0: i32) -> (i32, i32) {
    %c0_i32 = arith.constant 0 : i32
    %c0_i32_0 = arith.constant 0 : i32
    return %arg0, %c0_i32 : i32, i32
  }
  func.func @transform_8(%arg0: i32) -> (i32, i32) {
    %c0_i32 = arith.constant 0 : i32
    %c0_i32_0 = arith.constant 0 : i32
    return %arg0, %c0_i32 : i32, i32
  }
}

</mosaic_0001>

<bundles_post_ra>
// kernel: tpu_custom_call.1
= control target key start
LH: loop header
LB: loop body
LE: loop exit
PB: predicated region body
PF: predicated region fallthrough
CT: control target
= control target key end

     0   :  { %14 = vsyncpa [#allocation3], 0  ;;  %s6035_s0 = inlined_call_operand.hbm [shape: f32[64,512], index: 0, kind: input, shape index: {}]   ;;  %s6036_s1 = inlined_call_operand.hbm [shape: f32[1,512], index: 1, kind: input, shape index: {}]   ;;  %s6037_s2 = inlined_call_operand.vmem [shape: f32[1,512], index: 2, kind: input, shape index: {}]   ;;  %s6038_s3 = inlined_call_operand.hbm [shape: bf16[512,512], index: 3, kind: input, shape index: {}]   ;;  %s6039_s4 = inlined_call_operand.hbm [shape: bf16[512,512], index: 4, kind: input, shape index: {}]   ;;  %s6040_s5 = inlined_call_operand.hbm [shape: bf16[512,512], index: 5, kind: input, shape index: {}]   ;;  %s6041_s6 = inlined_call_operand.hbm [shape: bf16[64,512], index: 6, kind: output, shape index: {0}]   ;;  %s6042_s7 = inlined_call_operand.hbm [shape: bf16[64,512], index: 7, kind: output, shape index: {1}]   ;;  %s6043_s8 = inlined_call_operand.hbm [shape: bf16[64,512], index: 8, kind: output, shape index: {2}]  }
   0x1   :  { %15 = vsyncpa [#allocation6], 0 }
   0x2   :  { %16 = vsyncpa [#allocation9], 0 }
   0x3   :  { %17 = vsyncpa [#allocation4], 0 }
   0x4   :  { %18 = vsyncpa [#allocation13], 0  ;;  %s5423_s27 = smov [#allocation5]   ;;  %s5237_s9 = scalar_lea.hbm %s6036_s1, 64 }
   0x5   :  { %s37_s28 = sshll.u32 %s5423_s27, 4  ;;  %p5238_p0 = scmp.ne.s32.totalorder %s6036_s1, %s5237_s9  ;;  %s38_s28 = int_to_ptr.vmem [resolvable:$true] %s37_s28 }
   0x6   :  { %p5241_p1 = scmp.lt.u32.totalorder %s5237_s9, %s6036_s1 }
   0x8   :  { %p5243_p2 = pnand %p5241_p1, %p5238_p0 }
   0xa   :  { %5246 = shalt.err (!%p5243_p2)
}
   0xb   :  { %s5247_s14 = scalar_lea.vmem %s38_s28, 64  ;;  %p5252_p4 = scmp.lt.s32.totalorder %s38_s28, %s38_s28 }
   0xc   :  { %p5248_p3 = scmp.ne.s32.totalorder %s38_s28, %s5247_s14  ;;  %p5253_p5 = scmp.lt.s32.totalorder %s5247_s14, %s5247_s14 }
   0xe   :  { %p5254_p6 = por %p5253_p5, %p5252_p4 }
  0x10   :  { %p5255_p7 = pnand %p5254_p6, %p5248_p3 }
  0x12   :  { %5258 = shalt.err (!%p5255_p7)
}
  0x13   :  { %40 = dma.hbm_to_vmem [thread:$0]  %s6036_s1, 64, %s38_s28, [#allocation6]  }
  0x14   :  { %s5424_s17 = smov [#allocation8]   ;;  %s5425_s19 = smov [#allocation2]  }
  0x15   :  { %s60_s18 = sshll.u32 %s5424_s17, 4  ;;  %s24_s20 = sshll.u32 %s5425_s19, 4  ;;  %s61_s18 = int_to_ptr.vmem [resolvable:$true] %s60_s18  ;;  %s25_s20 = int_to_ptr.vmem [resolvable:$true] %s24_s20 }
  0x16   :  { %s5259_s23 = scalar_lea.hbm %s6039_s4, 16384 }
  0x17   :  { %p5260_p8 = scmp.ne.s32.totalorder %s6039_s4, %s5259_s23  ;;  %p5263_p9 = scmp.lt.u32.totalorder %s5259_s23, %s6039_s4 }
  0x19   :  { %p5265_p10 = pnand %p5263_p9, %p5260_p8 }
  0x1b   :  { %5268 = shalt.err (!%p5265_p10)
}
  0x1c   :  { %s5269_s1 = scalar_lea.vmem %s61_s18, 16384  ;;  %p5274_p12 = scmp.lt.s32.totalorder %s61_s18, %s61_s18 }
  0x1d   :  { %p5270_p11 = scmp.ne.s32.totalorder %s61_s18, %s5269_s1  ;;  %p5275_p13 = scmp.lt.s32.totalorder %s5269_s1, %s5269_s1 }
  0x1f   :  { %p5276_p0 = por %p5275_p13, %p5274_p12 }
  0x21   :  { %p5277_p1 = pnand %p5276_p0, %p5270_p11 }
  0x23   :  { %5280 = shalt.err (!%p5277_p1)
}
  0x24   :  { %s5426_s28 = smov 256   ;;  %s5427_s29 = smov 16  }
  0x25   :  { %66 = dma.hbm_to_vmem [thread:$0]  %s6039_s4, 16384, %s61_s18, [#allocation9], %s5426_s28, %s5426_s28, %s5427_s29  }
  0x26   :  { %s5281_s12 = scalar_lea.hbm %s6035_s0, 4096 }
  0x27   :  { %p5282_p2 = scmp.ne.s32.totalorder %s6035_s0, %s5281_s12  ;;  %p5285_p3 = scmp.lt.u32.totalorder %s5281_s12, %s6035_s0 }
  0x29   :  { %p5287_p4 = pnand %p5285_p3, %p5282_p2 }
  0x2b   :  { %5290 = shalt.err (!%p5287_p4)
}
  0x2c   :  { %s5291_s17 = scalar_lea.vmem %s25_s20, 4096  ;;  %p5296_p6 = scmp.lt.s32.totalorder %s25_s20, %s25_s20 }
  0x2d   :  { %p5292_p5 = scmp.ne.s32.totalorder %s25_s20, %s5291_s17  ;;  %p5297_p7 = scmp.lt.s32.totalorder %s5291_s17, %s5291_s17 }
  0x2f   :  { %p5298_p8 = por %p5297_p7, %p5296_p6 }
  0x31   :  { %p5299_p9 = pnand %p5298_p8, %p5292_p5 }
  0x33   :  { %5302 = shalt.err (!%p5299_p9)
}
  0x34   :  { %s5428_s4 = smov 512   ;;  %s5429_s18 = smov 32  }
  0x35   :  { %30 = dma.hbm_to_vmem [thread:$0]  %s6035_s0, 4096, %s25_s20, [#allocation3], %s5428_s4, %s5428_s4, %s5429_s18  }
  0x36   :  { %s5430_s22 = smov [#allocation7]   ;;  %s5431_s24 = smov [#allocation10]  }
  0x37   :  { %s48_s23 = sshll.u32 %s5430_s22, 4  ;;  %s72_s25 = sshll.u32 %s5431_s24, 4  ;;  %s49_s23 = int_to_ptr.vmem [resolvable:$true] %s48_s23  ;;  %s73_s25 = int_to_ptr.vmem [resolvable:$true] %s72_s25 }
  0x38   :  { %s5303_s1 = scalar_lea.hbm %s6038_s3, 16384 }
  0x39   :  { %p5304_p10 = scmp.ne.s32.totalorder %s6038_s3, %s5303_s1  ;;  %p5307_p11 = scmp.lt.u32.totalorder %s5303_s1, %s6038_s3 }
  0x3b   :  { %p5309_p12 = pnand %p5307_p11, %p5304_p10 }
  0x3d   :  { %5312 = shalt.err (!%p5309_p12)
}
  0x3e   :  { %s5313_s0 = scalar_lea.vmem %s49_s23, 16384  ;;  %p5318_p0 = scmp.lt.s32.totalorder %s49_s23, %s49_s23 }
  0x3f   :  { %p5314_p13 = scmp.ne.s32.totalorder %s49_s23, %s5313_s0  ;;  %p5319_p1 = scmp.lt.s32.totalorder %s5313_s0, %s5313_s0 }
  0x41   :  { %p5320_p2 = por %p5319_p1, %p5318_p0 }
  0x43   :  { %p5321_p3 = pnand %p5320_p2, %p5314_p13 }
  0x45   :  { %5324 = shalt.err (!%p5321_p3)
}
  0x46   :  { %54 = dma.hbm_to_vmem [thread:$0]  %s6038_s3, 16384, %s49_s23, [#allocation6], %s5426_s28, %s5426_s28, %s5427_s29  }
  0x47   :  { %s5325_s15 = scalar_lea.hbm %s6040_s5, 16384 }
  0x48   :  { %p5326_p4 = scmp.ne.s32.totalorder %s6040_s5, %s5325_s15  ;;  %p5329_p5 = scmp.lt.u32.totalorder %s5325_s15, %s6040_s5 }
  0x4a   :  { %p5331_p6 = pnand %p5329_p5, %p5326_p4 }
  0x4c   :  { %5334 = shalt.err (!%p5331_p6)
}
  0x4d   :  { %s5335_s19 = scalar_lea.vmem %s73_s25, 16384  ;;  %p5340_p8 = scmp.lt.s32.totalorder %s73_s25, %s73_s25 }
  0x4e   :  { %p5336_p7 = scmp.ne.s32.totalorder %s73_s25, %s5335_s19  ;;  %p5341_p9 = scmp.lt.s32.totalorder %s5335_s19, %s5335_s19 }
  0x50   :  { %p5342_p10 = por %p5341_p9, %p5340_p8 }
  0x52   :  { %p5343_p11 = pnand %p5342_p10, %p5336_p7 }
  0x54   :  { %5346 = shalt.err (!%p5343_p11)
}
  0x55   :  { %78 = dma.hbm_to_vmem [thread:$0]  %s6040_s5, 16384, %s73_s25, [#allocation9], %s5426_s28, %s5426_s28, %s5427_s29  }
  0x56   :  { %5413 = dma.done.wait [#allocation3], 4096  }
  0x57   :  { %5414 = vsyncadd [#allocation3], 4294963200 }
  0x58   :  { %5415 = dma.done.wait [#allocation6], 16448  }
  0x59   :  { %5416 = vsyncadd [#allocation6], 4294950848 }
  0x5a   :  { %5417 = dma.done.wait [#allocation9], 32768  }
  0x5b   :  { %5418 = vsyncadd [#allocation9], 4294934528  ;;  %v94_v0 = vld [vmem:[#allocation2] sm:$0xff]  ;;  %v95_v1 = vld [vmem:[#allocation2 + $0x8] sm:$0xff]  ;;  %s5433_s24 = smov [#allocation11]  }
  0x5c   :  { %v96_v2 = vld [vmem:[#allocation2 + $0x10] sm:$0xff]  ;;  %v128_v3 = vadd.f32 %v95_v1, %v94_v0  ;;  %v102_v4 = vld [vmem:[#allocation2 + $0x40] sm:$0xff]  ;;  %v103_v5 = vld [vmem:[#allocation2 + $0x48] sm:$0xff]  ;;  %s3980_s25 = sshll.u32 %s5433_s24, 4  ;;  %s5983_s25 = int_to_ptr.vmem [resolvable:$true] %s3980_s25 }
  0x5d   :  { %v97_v6 = vld [vmem:[#allocation2 + $0x18] sm:$0xff]  ;;  %v104_v7 = vld [vmem:[#allocation2 + $0x50] sm:$0xff]  ;;  %v138_v8 = vadd.f32 %v103_v5, %v102_v4  ;;  %v98_v9 = vld [vmem:[#allocation2 + $0x20] sm:$0xff] }
  0x5e   :  { %v129_v10 = vadd.f32 %v128_v3, %v96_v2  ;;  %v105_v11 = vld [vmem:[#allocation2 + $0x58] sm:$0xff]  ;;  %v99_v12 = vld [vmem:[#allocation2 + $0x28] sm:$0xff]  ;;  %v100_v13 = vld [vmem:[#allocation2 + $0x30] sm:$0xff] }
  0x5f   :  { %v139_v14 = vadd.f32 %v138_v8, %v104_v7  ;;  %v133_v15 = vadd.f32 %v99_v12, %v98_v9  ;;  %v106_v16 = vld [vmem:[#allocation2 + $0x60] sm:$0xff]  ;;  %v107_v17 = vld [vmem:[#allocation2 + $0x68] sm:$0xff]  ;;  %v108_v18 = vld [vmem:[#allocation2 + $0x70] sm:$0xff] }
  0x60   :  { %v130_v19 = vadd.f32 %v129_v10, %v97_v6  ;;  %v101_v20 = vld [vmem:[#allocation2 + $0x38] sm:$0xff]  ;;  %v143_v21 = vadd.f32 %v107_v17, %v106_v16  ;;  %v110_v22 = vld [vmem:[#allocation2 + $0x80] sm:$0xff]  ;;  %v111_v23 = vld [vmem:[#allocation2 + $0x88] sm:$0xff] }
  0x61   :  { %v140_v24 = vadd.f32 %v139_v14, %v105_v11  ;;  %v134_v25 = vadd.f32 %v133_v15, %v100_v13  ;;  %v109_v26 = vld [vmem:[#allocation2 + $0x78] sm:$0xff]  ;;  %v112_v27 = vld [vmem:[#allocation2 + $0x90] sm:$0xff]  ;;  %v148_v28 = vadd.f32 %v111_v23, %v110_v22  ;;  %v114_v29 = vld [vmem:[#allocation2 + $0xa0] sm:$0xff] }
  0x62   :  { %131 = vadd.xlane.f32.xlu0 %v130_v19  ;;  %v144_v30 = vadd.f32 %v143_v21, %v108_v18  ;;  %v113_v31 = vld [vmem:[#allocation2 + $0x98] sm:$0xff]  ;;  %v115_v32 = vld [vmem:[#allocation2 + $0xa8] sm:$0xff]  ;;  %v116_v33 = vld [vmem:[#allocation2 + $0xb0] sm:$0xff] }
  0x63   :  { %141 = vadd.xlane.f32.xlu1 %v140_v24  ;;  %v135_v34 = vadd.f32 %v134_v25, %v101_v20  ;;  %v149_v35 = vadd.f32 %v148_v28, %v112_v27  ;;  %v153_v36 = vadd.f32 %v115_v32, %v114_v29  ;;  %v118_v37 = vld [vmem:[#allocation2 + $0xc0] sm:$0xff]  ;;  %v119_v38 = vld [vmem:[#allocation2 + $0xc8] sm:$0xff]  ;;  %v120_v39 = vld [vmem:[#allocation2 + $0xd0] sm:$0xff] }
  0x64   :  { %v145_v40 = vadd.f32 %v144_v30, %v109_v26  ;;  %v117_v41 = vld [vmem:[#allocation2 + $0xb8] sm:$0xff]  ;;  %v158_v42 = vadd.f32 %v119_v38, %v118_v37  ;;  %v122_v43 = vld [vmem:[#allocation2 + $0xe0] sm:$0xff]  ;;  %v123_v44 = vld [vmem:[#allocation2 + $0xe8] sm:$0xff] }
  0x65   :  { %v154_v45 = vadd.f32 %v153_v36, %v116_v33  ;;  %v121_v46 = vld [vmem:[#allocation2 + $0xd8] sm:$0xff]  ;;  %v124_v47 = vld [vmem:[#allocation2 + $0xf0] sm:$0xff]  ;;  %v163_v48 = vadd.f32 %v123_v44, %v122_v43  ;;  %v150_v49 = vadd.f32 %v149_v35, %v113_v31  ;;  %v5206_v36 = vld [vmem:[#allocation2 + $0x8] sm:$0xff] }
  0x66   :  { %136 = vadd.xlane.f32.xlu0 %v135_v34  ;;  %v159_v50 = vadd.f32 %v158_v42, %v120_v39  ;;  %v125_v51 = vld [vmem:[#allocation2 + $0xf8] sm:$0xff]  ;;  %v4615_v57 = vld [vmem:[#allocation7 + $0xc] ss:$16 sps:$4 sm:$0xff]   ;;  %v4617_v58 = vld [vmem:[#allocation7] ss:$16 sps:$4 sm:$0xff]  }
  0x67   :  { %146 = vadd.xlane.f32.xlu1 %v145_v40  ;;  %v155_v52 = vadd.f32 %v154_v45, %v117_v41  ;;  %v164_v53 = vadd.f32 %v163_v48, %v124_v47  ;;  %v4613_v56 = vld [vmem:[#allocation7 + $0x4] ss:$16 sps:$4 sm:$0xff]   ;;  %v4618_v59 = vld [vmem:[#allocation7 + $0x8] ss:$16 sps:$4 sm:$0xff]   ;;  %v4621_v61 = vld [vmem:[#allocation7 + $0x2c] ss:$16 sps:$4 sm:$0xff]   ;;  %1373 = vmatprep.subr.bf16.mxu1 %v4615_v57 }
  0x68   :  { %v160_v54 = vadd.f32 %v159_v50, %v121_v46  ;;  %v4619_v60 = vld [vmem:[#allocation7 + $0x24] ss:$16 sps:$4 sm:$0xff]   ;;  %1227 = vmatprep.subr.bf16.mxu0 %v4613_v56  ;;  %1374 = vmatpush1.bf16.msra.mxu1 %v4618_v59  ;;  %v4623_v62 = vld [vmem:[#allocation7 + $0x20] ss:$16 sps:$4 sm:$0xff]   ;;  %v4624_v63 = vld [vmem:[#allocation7 + $0x28] ss:$16 sps:$4 sm:$0xff]  }
  0x69   :  { %v165_v55 = vadd.f32 %v164_v53, %v125_v51  ;;  %1228 = vmatpush1.bf16.msra.mxu0 %v4617_v58  ;;  %1375 = vmatprep.subr.bf16.mxu1 %v4621_v61  ;;  %v4625_v0 = vld [vmem:[#allocation7 + $0x44] ss:$16 sps:$4 sm:$0xff]   ;;  %v4627_v1 = vld [vmem:[#allocation7 + $0x4c] ss:$16 sps:$4 sm:$0xff]   ;;  %v4629_v2 = vld [vmem:[#allocation7 + $0x40] ss:$16 sps:$4 sm:$0xff]  }
  0x6a   :  { %151 = vadd.xlane.f32.xlu0 %v150_v49  ;;  %1229 = vmatprep.subr.bf16.mxu0 %v4619_v60  ;;  %v4630_v3 = vld [vmem:[#allocation7 + $0x48] ss:$16 sps:$4 sm:$0xff]   ;;  %v4631_v4 = vld [vmem:[#allocation7 + $0x64] ss:$16 sps:$4 sm:$0xff]   ;;  %v4633_v5 = vld [vmem:[#allocation7 + $0x6c] ss:$16 sps:$4 sm:$0xff]  }
  0x6b   :  { %156 = vadd.xlane.f32.xlu1 %v155_v52  ;;  %v4635_v6 = vld [vmem:[#allocation7 + $0x60] ss:$16 sps:$4 sm:$0xff]   ;;  %v4636_v7 = vld [vmem:[#allocation7 + $0x68] ss:$16 sps:$4 sm:$0xff]   ;;  %v4637_v8 = vld [vmem:[#allocation7 + $0x84] ss:$16 sps:$4 sm:$0xff]  }
  0x6c   :  { %1376 = vmatpush1.bf16.msra.mxu1 %v4624_v63  ;;  %v4639_v9 = vld [vmem:[#allocation7 + $0x8c] ss:$16 sps:$4 sm:$0xff]   ;;  %v4641_v10 = vld [vmem:[#allocation7 + $0x80] ss:$16 sps:$4 sm:$0xff]   ;;  %v4642_v11 = vld [vmem:[#allocation7 + $0x88] ss:$16 sps:$4 sm:$0xff]  }
  0x6d   :  { %1230 = vmatpush1.bf16.msra.mxu0 %v4623_v62  ;;  %1377 = vmatprep.subr.bf16.mxu1 %v4627_v1  ;;  %v4643_v12 = vld [vmem:[#allocation7 + $0xa4] ss:$16 sps:$4 sm:$0xff]   ;;  %v4645_v13 = vld [vmem:[#allocation7 + $0xac] ss:$16 sps:$4 sm:$0xff]   ;;  %v4647_v14 = vld [vmem:[#allocation7 + $0xa0] ss:$16 sps:$4 sm:$0xff]  }
  0x6e   :  { %161 = vadd.xlane.f32.xlu0 %v160_v54  ;;  %1231 = vmatprep.subr.bf16.mxu0 %v4625_v0  ;;  %v4648_v15 = vld [vmem:[#allocation7 + $0xa8] ss:$16 sps:$4 sm:$0xff]   ;;  %v4649_v16 = vld [vmem:[#allocation7 + $0xc4] ss:$16 sps:$4 sm:$0xff]   ;;  %v4651_v17 = vld [vmem:[#allocation7 + $0xcc] ss:$16 sps:$4 sm:$0xff]  }
  0x6f   :  { %166 = vadd.xlane.f32.xlu1 %v165_v55  ;;  %v4653_v18 = vld [vmem:[#allocation7 + $0xc0] ss:$16 sps:$4 sm:$0xff]   ;;  %v4654_v19 = vld [vmem:[#allocation7 + $0xc8] ss:$16 sps:$4 sm:$0xff]   ;;  %v4655_v20 = vld [vmem:[#allocation7 + $0xe4] ss:$16 sps:$4 sm:$0xff]  }
  0x70   :  { %1378 = vmatpush1.bf16.msra.mxu1 %v4630_v3  ;;  %v4657_v21 = vld [vmem:[#allocation7 + $0xec] ss:$16 sps:$4 sm:$0xff]   ;;  %v4659_v22 = vld [vmem:[#allocation7 + $0xe0] ss:$16 sps:$4 sm:$0xff]   ;;  %v4660_v23 = vld [vmem:[#allocation7 + $0xe8] ss:$16 sps:$4 sm:$0xff]  }
  0x71   :  { %1232 = vmatpush1.bf16.msra.mxu0 %v4629_v2  ;;  %1379 = vmatprep.subr.bf16.mxu1 %v4633_v5  ;;  %v4661_v24 = vld [vmem:[#allocation7 + $0x104] ss:$16 sps:$4 sm:$0xff]   ;;  %v4663_v25 = vld [vmem:[#allocation7 + $0x10c] ss:$16 sps:$4 sm:$0xff]   ;;  %v4665_v26 = vld [vmem:[#allocation7 + $0x100] ss:$16 sps:$4 sm:$0xff]  }
  0x72   :  { %1233 = vmatprep.subr.bf16.mxu0 %v4631_v4  ;;  %v4666_v27 = vld [vmem:[#allocation7 + $0x108] ss:$16 sps:$4 sm:$0xff]   ;;  %v4667_v28 = vld [vmem:[#allocation7 + $0x124] ss:$16 sps:$4 sm:$0xff]   ;;  %v4669_v29 = vld [vmem:[#allocation7 + $0x12c] ss:$16 sps:$4 sm:$0xff]  }
  0x73   :  { %v5205_v34 = vld [vmem:[#allocation2] sm:$0xff]  ;;  %v5207_v38 = vld [vmem:[#allocation2 + $0x10] sm:$0xff]  ;;  %v5208_v40 = vld [vmem:[#allocation2 + $0x18] sm:$0xff] }
  0x74   :  { %1380 = vmatpush1.bf16.msra.mxu1 %v4636_v7  ;;  %v5209_v42 = vld [vmem:[#allocation2 + $0x40] sm:$0xff]  ;;  %v5210_v44 = vld [vmem:[#allocation2 + $0x48] sm:$0xff]  ;;  %v5211_v47 = vld [vmem:[#allocation2 + $0x50] sm:$0xff] }
  0x75   :  { %1234 = vmatpush1.bf16.msra.mxu0 %v4635_v6  ;;  %1381 = vmatprep.subr.bf16.mxu1 %v4639_v9  ;;  %v5212_v49 = vld [vmem:[#allocation2 + $0x58] sm:$0xff]  ;;  %v5213_v60 = vld [vmem:[#allocation2 + $0x20] sm:$0xff]  ;;  %v5214_v62 = vld [vmem:[#allocation2 + $0x28] sm:$0xff] }
  0x76   :  { %1235 = vmatprep.subr.bf16.mxu0 %v4637_v8  ;;  %v5215_v2 = vld [vmem:[#allocation2 + $0x60] sm:$0xff]  ;;  %v5216_v4 = vld [vmem:[#allocation2 + $0x68] sm:$0xff] }
  0x78   :  { %1382 = vmatpush1.bf16.msra.mxu1 %v4642_v11 }
  0x79   :  { %1236 = vmatpush1.bf16.msra.mxu0 %v4641_v10  ;;  %1383 = vmatprep.subr.bf16.mxu1 %v4645_v13 }
  0x7a   :  { %1237 = vmatprep.subr.bf16.mxu0 %v4643_v12  ;;  %v5217_v12 = vld [vmem:[#allocation2 + $0x30] sm:$0xff] }
  0x7c   :  { %1384 = vmatpush1.bf16.msra.mxu1 %v4648_v15 }
  0x7d   :  { %1238 = vmatpush1.bf16.msra.mxu0 %v4647_v14  ;;  %1385 = vmatprep.subr.bf16.mxu1 %v4651_v17  ;;  %v5218_v14 = vld [vmem:[#allocation2 + $0x38] sm:$0xff] }
  0x7e   :  { %1239 = vmatprep.subr.bf16.mxu0 %v4649_v16 }
  0x80   :  { %1386 = vmatpush1.bf16.msra.mxu1 %v4654_v19 }
  0x81   :  { %1240 = vmatpush1.bf16.msra.mxu0 %v4653_v18  ;;  %1387 = vmatprep.subr.bf16.mxu1 %v4657_v21 }
  0x82   :  { %1241 = vmatprep.subr.bf16.mxu0 %v4655_v20  ;;  %v5219_v20 = vld [vmem:[#allocation2 + $0x80] sm:$0xff] }
  0x84   :  { %1388 = vmatpush1.bf16.msra.mxu1 %v4660_v23 }
  0x85   :  { %1242 = vmatpush1.bf16.msra.mxu0 %v4659_v22  ;;  %1389 = vmatprep.subr.bf16.mxu1 %v4663_v25  ;;  %v5220_v22 = vld [vmem:[#allocation2 + $0x88] sm:$0xff] }
  0x86   :  { %1243 = vmatprep.subr.bf16.mxu0 %v4661_v24 }
  0x88   :  { %1390 = vmatpush1.bf16.msra.mxu1 %v4666_v27 }
  0x89   :  { %1244 = vmatpush1.bf16.msra.mxu0 %v4665_v26  ;;  %1391 = vmatprep.subr.bf16.mxu1 %v4669_v29  ;;  %v5221_v26 = vld [vmem:[#allocation2 + $0xa0] sm:$0xff] }
  0x8a   :  { %1245 = vmatprep.subr.bf16.mxu0 %v4667_v28  ;;  %v5222_v28 = vld [vmem:[#allocation2 + $0xa8] sm:$0xff] }
  0xef   :  { %v132_v30 = vpop.xlane.xlu0 %131 }
  0xf0   :  { %v169_v31 = vmul.f32 0.001953125, %v132_v30  ;;  %v142_v32 = vpop.xlane.xlu1 %141 }
  0xf1   :  { %v171_v33 = vmul.f32 0.001953125, %v142_v32 }
  0xf2   :  { %v5549_v35 = vsub.f32 %v5205_v34, %v169_v31  ;;  %v5551_v37 = vsub.f32 %v5206_v36, %v169_v31  ;;  %v5553_v39 = vsub.f32 %v5207_v38, %v169_v31  ;;  %v5555_v41 = vsub.f32 %v5208_v40, %v169_v31  ;;  %v5223_v38 = vld [vmem:[#allocation2 + $0x70] sm:$0xff] }
  0xf3   :  { %v5557_v43 = vsub.f32 %v5209_v42, %v171_v33  ;;  %v5559_v45 = vsub.f32 %v5210_v44, %v171_v33  ;;  %v137_v46 = vpop.xlane.xlu0 %136  ;;  %v5561_v48 = vsub.f32 %v5211_v47, %v171_v33  ;;  %v5563_v50 = vsub.f32 %v5212_v49, %v171_v33  ;;  %v5224_v42 = vld [vmem:[#allocation2 + $0x78] sm:$0xff] }
  0xf4   :  { %v170_v51 = vmul.f32 0.001953125, %v137_v46  ;;  %v147_v52 = vpop.xlane.xlu1 %146  ;;  %v209_v53 = vmul.f32 %v5549_v35, %v5549_v35  ;;  %v210_v54 = vmul.f32 %v5551_v37, %v5551_v37  ;;  %v211_v55 = vmul.f32 %v5553_v39, %v5553_v39 }
  0xf5   :  { %v172_v56 = vmul.f32 0.001953125, %v147_v52  ;;  %v212_v57 = vmul.f32 %v5555_v41, %v5555_v41  ;;  %v217_v58 = vmul.f32 %v5557_v43, %v5557_v43  ;;  %v218_v59 = vmul.f32 %v5559_v45, %v5559_v45 }
  0xf6   :  { %v5577_v61 = vsub.f32 %v5213_v60, %v170_v51  ;;  %v5579_v63 = vsub.f32 %v5214_v62, %v170_v51  ;;  %v241_v0 = vadd.f32 %v210_v54, %v209_v53  ;;  %v219_v1 = vmul.f32 %v5561_v48, %v5561_v48  ;;  %v5226_v53 = vld [vmem:[#allocation2 + $0xc0] sm:$0xff]  ;;  %v5229_v62 = vld [vmem:[#allocation2 + $0xe8] sm:$0xff] }
  0xf7   :  { %v5583_v3 = vsub.f32 %v5215_v2, %v172_v56  ;;  %v5585_v5 = vsub.f32 %v5216_v4, %v172_v56  ;;  %v152_v6 = vpop.xlane.xlu0 %151  ;;  %v220_v7 = vmul.f32 %v5563_v50, %v5563_v50  ;;  %v251_v8 = vadd.f32 %v218_v59, %v217_v58  ;;  %v5228_v59 = vld [vmem:[#allocation2 + $0xe0] sm:$0xff] }
  0xf8   :  { %v173_v9 = vmul.f32 0.001953125, %v152_v6  ;;  %v157_v10 = vpop.xlane.xlu1 %156  ;;  %v242_v11 = vadd.f32 %v241_v0, %v211_v55  ;;  %v5589_v13 = vsub.f32 %v5217_v12, %v170_v51  ;;  %v5591_v15 = vsub.f32 %v5218_v14, %v170_v51  ;;  %v5225_v51 = vld [vmem:[#allocation2 + $0x90] sm:$0xff]  ;;  %v5227_v55 = vld [vmem:[#allocation2 + $0xc8] sm:$0xff]  ;;  %v5230_v6 = vld [vmem:[#allocation2 + $0x98] sm:$0xff] }
  0xf9   :  { %v174_v16 = vmul.f32 0.001953125, %v157_v10  ;;  %v252_v17 = vadd.f32 %v251_v8, %v219_v1  ;;  %v213_v18 = vmul.f32 %v5577_v61, %v5577_v61  ;;  %v214_v19 = vmul.f32 %v5579_v63, %v5579_v63  ;;  %v5231_v14 = vld [vmem:[#allocation2 + $0xb0] sm:$0xff] }
  0xfa   :  { %v5597_v21 = vsub.f32 %v5219_v20, %v173_v9  ;;  %v5599_v23 = vsub.f32 %v5220_v22, %v173_v9  ;;  %v243_v24 = vadd.f32 %v242_v11, %v212_v57  ;;  %v215_v25 = vmul.f32 %v5589_v13, %v5589_v13 }
  0xfb   :  { %v5603_v27 = vsub.f32 %v5221_v26, %v174_v16  ;;  %v5605_v29 = vsub.f32 %v5222_v28, %v174_v16  ;;  %v162_v30 = vpop.xlane.xlu0 %161  ;;  %v253_v31 = vadd.f32 %v252_v17, %v220_v7  ;;  %v216_v32 = vmul.f32 %v5591_v15, %v5591_v15 }
  0xfc   :  { %v175_v33 = vmul.f32 0.001953125, %v162_v30  ;;  %244 = vadd.xlane.f32.xlu0 %v243_v24  ;;  %v167_v34 = vpop.xlane.xlu1 %166  ;;  %v246_v36 = vadd.f32 %v214_v19, %v213_v18  ;;  %v5609_v40 = vsub.f32 %v5223_v38, %v172_v56  ;;  %v5611_v44 = vsub.f32 %v5224_v42, %v172_v56  ;;  %v5232_v18 = vld [vmem:[#allocation2 + $0xb8] sm:$0xff] }
  0xfd   :  { %v176_v46 = vmul.f32 0.001953125, %v167_v34  ;;  %v221_v47 = vmul.f32 %v5583_v3, %v5583_v3  ;;  %v222_v49 = vmul.f32 %v5585_v5, %v5585_v5  ;;  %v5617_v52 = vsub.f32 %v5225_v51, %v173_v9  ;;  %v5234_v34 = vld [vmem:[#allocation2 + $0xd8] sm:$0xff] }
  0xfe   :  { %v5619_v54 = vsub.f32 %v5226_v53, %v175_v33  ;;  %v5621_v57 = vsub.f32 %v5227_v55, %v175_v33  ;;  %v247_v58 = vadd.f32 %v246_v36, %v215_v25  ;;  %v223_v56 = vmul.f32 %v5609_v40, %v5609_v40  ;;  %v5236_v53 = vld [vmem:[#allocation2 + $0xf8] sm:$0xff] }
  0xff   :  { %v5625_v60 = vsub.f32 %v5228_v59, %v176_v46  ;;  %v5627_v0 = vsub.f32 %v5229_v62, %v176_v46  ;;  %v224_v1 = vmul.f32 %v5611_v44, %v5611_v44  ;;  %v256_v2 = vadd.f32 %v222_v49, %v221_v47  ;;  %v5235_v49 = vld [vmem:[#allocation2 + $0xf0] sm:$0xff] }
 0x100   :  { %254 = vadd.xlane.f32.xlu0 %v253_v31  ;;  %v248_v4 = vadd.f32 %v247_v58, %v216_v32  ;;  %v5631_v7 = vsub.f32 %v5230_v6, %v173_v9  ;;  %v225_v8 = vmul.f32 %v5597_v21, %v5597_v21  ;;  %v226_v10 = vmul.f32 %v5599_v23, %v5599_v23 }
 0x101   :  { %v257_v11 = vadd.f32 %v256_v2, %v223_v56  ;;  %v227_v12 = vmul.f32 %v5617_v52, %v5617_v52  ;;  %v5639_v17 = vsub.f32 %v5231_v14, %v174_v16  ;;  %v5641_v19 = vsub.f32 %v5232_v18, %v174_v16  ;;  %v5233_v16 = vld [vmem:[#allocation2 + $0xd0] sm:$0xff]  ;;  %v4672_v18 = vld [vmem:[#allocation7 + $0x128] ss:$16 sps:$4 sm:$0xff]  }
 0x102   :  { %249 = vadd.xlane.f32.xlu1 %v248_v4  ;;  %v228_v9 = vmul.f32 %v5631_v7, %v5631_v7  ;;  %v261_v20 = vadd.f32 %v226_v10, %v225_v8  ;;  %v229_v22 = vmul.f32 %v5603_v27, %v5603_v27  ;;  %v230_v24 = vmul.f32 %v5605_v29, %v5605_v29  ;;  %v4671_v14 = vld [vmem:[#allocation7 + $0x120] ss:$16 sps:$4 sm:$0xff]  }
 0x103   :  { %v258_v25 = vadd.f32 %v257_v11, %v224_v1  ;;  %v231_v26 = vmul.f32 %v5639_v17, %v5639_v17  ;;  %v232_v28 = vmul.f32 %v5641_v19, %v5641_v19  ;;  %v5653_v30 = vsub.f32 %v5233_v16, %v175_v33  ;;  %1246 = vmatpush1.bf16.msra.mxu0 %v4671_v14  ;;  %v4684_v16 = vld [vmem:[#allocation7 + $0x168] ss:$16 sps:$4 sm:$0xff]  }
 0x104   :  { %v262_v31 = vadd.f32 %v261_v20, %v227_v12  ;;  %v266_v32 = vadd.f32 %v230_v24, %v229_v22  ;;  %v5655_v36 = vsub.f32 %v5234_v34, %v175_v33  ;;  %v233_v38 = vmul.f32 %v5619_v54, %v5619_v54  ;;  %v4675_v20 = vld [vmem:[#allocation7 + $0x14c] ss:$16 sps:$4 sm:$0xff]   ;;  %1392 = vmatpush1.bf16.msra.mxu1 %v4672_v18  ;;  %v4677_v22 = vld [vmem:[#allocation7 + $0x140] ss:$16 sps:$4 sm:$0xff]   ;;  %v4678_v24 = vld [vmem:[#allocation7 + $0x148] ss:$16 sps:$4 sm:$0xff]  }
 0x105   :  { %v234_v42 = vmul.f32 %v5621_v57, %v5621_v57  ;;  %v235_v47 = vmul.f32 %v5653_v30, %v5653_v30  ;;  %v5663_v51 = vsub.f32 %v5235_v49, %v176_v46  ;;  %v5665_v55 = vsub.f32 %v5236_v53, %v176_v46  ;;  %1393 = vmatprep.subr.bf16.mxu1 %v4675_v20  ;;  %v4691_v49 = vld [vmem:[#allocation7 + $0x1a4] ss:$16 sps:$4 sm:$0xff]   ;;  %v4693_v53 = vld [vmem:[#allocation7 + $0x1ac] ss:$16 sps:$4 sm:$0xff]   ;;  %v4708_v14 = vld [vmem:[#allocation7 + $0x1e8] ss:$16 sps:$4 sm:$0xff]  }
 0x106   :  { %259 = vadd.xlane.f32.xlu1 %v258_v25  ;;  %v263_v58 = vadd.f32 %v262_v31, %v228_v9  ;;  %v267_v56 = vadd.f32 %v266_v32, %v231_v26  ;;  %v237_v33 = vmul.f32 %v5625_v60, %v5625_v60  ;;  %v236_v59 = vmul.f32 %v5655_v36, %v5655_v36  ;;  %v4673_v9 = vld [vmem:[#allocation7 + $0x144] ss:$16 sps:$4 sm:$0xff]   ;;  %v4681_v26 = vld [vmem:[#allocation7 + $0x16c] ss:$16 sps:$4 sm:$0xff]  }
 0x107   :  { %v271_v62 = vadd.f32 %v234_v42, %v233_v38  ;;  %v238_v1 = vmul.f32 %v5627_v0, %v5627_v0  ;;  %v239_v2 = vmul.f32 %v5663_v51, %v5663_v51  ;;  %v240_v6 = vmul.f32 %v5665_v55, %v5665_v55  ;;  %1247 = vmatprep.subr.bf16.mxu0 %v4673_v9  ;;  %v4679_v25 = vld [vmem:[#allocation7 + $0x164] ss:$16 sps:$4 sm:$0xff]   ;;  %v4687_v32 = vld [vmem:[#allocation7 + $0x18c] ss:$16 sps:$4 sm:$0xff]   ;;  %v4689_v38 = vld [vmem:[#allocation7 + $0x180] ss:$16 sps:$4 sm:$0xff]  }
 0x108   :  { %264 = vadd.xlane.f32.xlu0 %v263_v58  ;;  %v268_v4 = vadd.f32 %v267_v56, %v232_v28  ;;  %1248 = vmatpush1.bf16.msra.mxu0 %v4677_v22  ;;  %v4683_v28 = vld [vmem:[#allocation7 + $0x160] ss:$16 sps:$4 sm:$0xff]   ;;  %v4685_v31 = vld [vmem:[#allocation7 + $0x184] ss:$16 sps:$4 sm:$0xff]   ;;  %v338_v34 = vlaneseq  ;;  %v4690_v42 = vld [vmem:[#allocation7 + $0x188] ss:$16 sps:$4 sm:$0xff]  }
 0x109   :  { %v272_v46 = vadd.f32 %v271_v62, %v235_v47  ;;  %v276_v8 = vadd.f32 %v238_v1, %v237_v33  ;;  %1394 = vmatpush1.bf16.msra.mxu1 %v4678_v24  ;;  %1249 = vmatprep.subr.bf16.mxu0 %v4679_v25  ;;  %v4695_v58 = vld [vmem:[#allocation7 + $0x1a0] ss:$16 sps:$4 sm:$0xff]   ;;  %v4696_v56 = vld [vmem:[#allocation7 + $0x1a8] ss:$16 sps:$4 sm:$0xff]   ;;  %v5679_v33 = vld [vmem:[#allocation5] sm:$0xf] }
 0x10a   :  { %269 = vadd.xlane.f32.xlu1 %v268_v4  ;;  %1395 = vmatprep.subr.bf16.mxu1 %v4681_v26  ;;  %v5677_v47 = vshrl.u32 %v338_v34, 7  ;;  %v5685_v62 = vld [vmem:[%s6037_s2] sm:$0xf]  ;;  %v4697_v1 = vld [vmem:[#allocation7 + $0x1c4] ss:$16 sps:$4 sm:$0xff]   ;;  %s5432_s2 = smov [#allocation12]  }
 0x10b   :  { %v273_v10 = vadd.f32 %v272_v46, %v236_v59  ;;  %v277_v11 = vadd.f32 %v276_v8, %v239_v2  ;;  %v4699_v2 = vld [vmem:[#allocation7 + $0x1cc] ss:$16 sps:$4 sm:$0xff]   ;;  %v4701_v46 = vld [vmem:[#allocation7 + $0x1c0] ss:$16 sps:$4 sm:$0xff]   ;;  %v4703_v8 = vld [vmem:[#allocation7 + $0x1e4] ss:$16 sps:$4 sm:$0xff]  }
 0x10c   :  { %1250 = vmatpush1.bf16.msra.mxu0 %v4683_v28  ;;  %v348_v59 = vsub.s32 2, %v5677_v47  ;;  %v4711_v18 = vld [vmem:[#allocation7 + $0x204] ss:$16 sps:$4 sm:$0xff]   ;;  %v4714_v9 = vld [vmem:[#allocation7 + $0x20c] ss:$16 sps:$4 sm:$0xff]   ;;  %s3992_s23 = sshll.u32 %s5432_s2, 4  ;;  %s3993_s23 = int_to_ptr.vmem [resolvable:$true] %s3992_s23 }
 0x10d   :  { %274 = vadd.xlane.f32.xlu0 %v273_v10  ;;  %v278_v12 = vadd.f32 %v277_v11, %v240_v6  ;;  %1396 = vmatpush1.bf16.msra.mxu1 %v4684_v16  ;;  %v4702_v6 = vld [vmem:[#allocation7 + $0x1c8] ss:$16 sps:$4 sm:$0xff]   ;;  %v4705_v11 = vld [vmem:[#allocation7 + $0x1ec] ss:$16 sps:$4 sm:$0xff]   ;;  %s5347_s26 = scalar_lea.vmem %s3993_s23, 2048  ;;  %p5352_p13 = scmp.lt.s32.totalorder %s3993_s23, %s3993_s23 }
 0x10e   :  { %1251 = vmatprep.subr.bf16.mxu0 %v4685_v31  ;;  %1397 = vmatprep.subr.bf16.mxu1 %v4687_v32  ;;  %v5688_v4 = vrot.slane %v5679_v33, %v348_v59  ;;  %v5691_v10 = vrot.slane %v5685_v62, %v348_v59  ;;  %p5348_p12 = scmp.ne.s32.totalorder %s3993_s23, %s5347_s26  ;;  %p5353_p0 = scmp.lt.s32.totalorder %s5347_s26, %s5347_s26 }
 0x10f   :  { %279 = vadd.xlane.f32.xlu1 %v278_v12  ;;  %v4707_v12 = vld [vmem:[#allocation7 + $0x1e0] ss:$16 sps:$4 sm:$0xff]  }
 0x110   :  { %1252 = vmatpush1.bf16.msra.mxu0 %v4689_v38  ;;  %p5354_p1 = por %p5353_p0, %p5352_p13 }
 0x111   :  { %1398 = vmatpush1.bf16.msra.mxu1 %v4690_v42  ;;  %1253 = vmatprep.subr.bf16.mxu0 %v4691_v49  ;;  %v344_v49 = vsub.s32 1, %v5677_v47 }
 0x112   :  { %1399 = vmatprep.subr.bf16.mxu1 %v4693_v53  ;;  %p5355_p2 = pnand %p5354_p1, %p5348_p12 }
 0x114   :  { %1254 = vmatpush1.bf16.msra.mxu0 %v4695_v58 }
 0x115   :  { %1400 = vmatpush1.bf16.msra.mxu1 %v4696_v56  ;;  %1255 = vmatprep.subr.bf16.mxu0 %v4697_v1  ;;  %v340_v56 = vsub.s32 0, %v5677_v47 }
 0x116   :  { %1401 = vmatprep.subr.bf16.mxu1 %v4699_v2 }
 0x118   :  { %1256 = vmatpush1.bf16.msra.mxu0 %v4701_v46 }
 0x119   :  { %1402 = vmatpush1.bf16.msra.mxu1 %v4702_v6  ;;  %1257 = vmatprep.subr.bf16.mxu0 %v4703_v8  ;;  %v352_v6 = vsub.s32 3, %v5677_v47 }
 0x11a   :  { %1403 = vmatprep.subr.bf16.mxu1 %v4705_v11  ;;  %v5698_v11 = vrot.slane %v5679_v33, %v344_v49 }
 0x11c   :  { %1258 = vmatpush1.bf16.msra.mxu0 %v4707_v12 }
 0x11d   :  { %1404 = vmatpush1.bf16.msra.mxu1 %v4708_v14  ;;  %1300 = vmatprep.subr.bf16.mxu0 %v4711_v18 }
 0x11e   :  { %1446 = vmatprep.subr.bf16.mxu1 %v4714_v9 }
 0x189   :  { %v245_v20 = vpop.xlane.xlu0 %244 }
 0x18a   :  { %v281_v22 = vmul.f32 0.001953125, %v245_v20  ;;  %v5703_v20 = vrot.slane %v5679_v33, %v340_v56 }
 0x18c   :  { %v289_v24 = vadd.f32 1e-05, %v281_v22 }
 0x18d   :  { %v255_v25 = vpop.xlane.xlu0 %254 }
 0x18e   :  { %5189 = vrsqrt.f32 %v289_v24  ;;  %v283_v26 = vmul.f32 0.001953125, %v255_v25  ;;  %v5706_v24 = vrot.slane %v5685_v62, %v344_v49  ;;  %v5711_v25 = vrot.slane %v5685_v62, %v340_v56 }
 0x18f   :  { %v250_v28 = vpop.xlane.xlu1 %249 }
 0x190   :  { %v282_v16 = vmul.f32 0.001953125, %v250_v28  ;;  %v291_v31 = vadd.f32 1e-05, %v283_v26 }
 0x192   :  { %v290_v32 = vadd.f32 1e-05, %v282_v16  ;;  %5191 = vrsqrt.f32 %v291_v31 }
 0x193   :  { %v260_v34 = vpop.xlane.xlu1 %259 }
 0x194   :  { %5193 = vrsqrt.f32 %v290_v32  ;;  %v284_v38 = vmul.f32 0.001953125, %v260_v34 }
 0x195   :  { %v265_v42 = vpop.xlane.xlu0 %264 }
 0x196   :  { %v292_v53 = vadd.f32 1e-05, %v284_v38  ;;  %v285_v58 = vmul.f32 0.001953125, %v265_v42 }
 0x197   :  { %v270_v59 = vpop.xlane.xlu1 %269 }
 0x198   :  { %v5190_v1 = vpop.eup %5189  ;;  %5195 = vrsqrt.f32 %v292_v53  ;;  %v293_v2 = vadd.f32 1e-05, %v285_v58  ;;  %v286_v46 = vmul.f32 0.001953125, %v270_v59  ;;  %v5730_v59 = vrot.slane %v5685_v62, %v352_v6 }
 0x199   :  { %v306_v8 = vmul.f32 %v5190_v1, %v5551_v37  ;;  %v307_v12 = vmul.f32 %v5190_v1, %v5553_v39  ;;  %v305_v9 = vmul.f32 %v5190_v1, %v5549_v35  ;;  %v5714_v39 = vrot.slane %v5679_v33, %v352_v6 }
 0x19a   :  { %5197 = vrsqrt.f32 %v293_v2  ;;  %v294_v14 = vadd.f32 1e-05, %v286_v46  ;;  %v275_v18 = vpop.xlane.xlu0 %274  ;;  %v308_v31 = vmul.f32 %v5190_v1, %v5555_v41 }
 0x19b   :  { %v287_v22 = vmul.f32 0.001953125, %v275_v18  ;;  %v360_v26 = vmul.f32 %v5688_v4, %v307_v12  ;;  %v359_v16 = vmul.f32 %v5698_v11, %v306_v8  ;;  %v358_v34 = vmul.f32 %v5703_v20, %v305_v9 }
 0x19c   :  { %v5708_v47 = vpop.eup %5191  ;;  %5199 = vrsqrt.f32 %v294_v14  ;;  %v280_v37 = vpop.xlane.xlu1 %279  ;;  %v5736_v2 = vmul.f32 %v5714_v39, %v308_v31 }
 0x19d   :  { %v295_v35 = vadd.f32 1e-05, %v287_v22  ;;  %v288_v28 = vmul.f32 0.001953125, %v280_v37  ;;  %v314_v38 = vmul.f32 %v5708_v47, %v5559_v45  ;;  %v313_v42 = vmul.f32 %v5708_v47, %v5557_v43 }
 0x19e   :  { %v5194_v32 = vpop.eup %5193  ;;  %v413_v33 = vadd.f32 %v5691_v10, %v360_v26  ;;  %v411_v46 = vadd.f32 %v5711_v25, %v358_v34  ;;  %v316_v37 = vmul.f32 %v5708_v47, %v5563_v50  ;;  %v4720_v34 = vld [vmem:[#allocation7 + $0x22c] ss:$16 sps:$4 sm:$0xff]  }
 0x19f   :  { %5201 = vrsqrt.f32 %v295_v35  ;;  %v296_v49 = vadd.f32 1e-05, %v288_v28  ;;  %v310_v53 = vmul.f32 %v5194_v32, %v5579_v63  ;;  %v309_v58 = vmul.f32 %v5194_v32, %v5577_v61  ;;  %v4709_v35 = vld [vmem:[#allocation7 + $0x200] ss:$16 sps:$4 sm:$0xff]   ;;  %v4712_v28 = vld [vmem:[#allocation7 + $0x208] ss:$16 sps:$4 sm:$0xff]  }
 0x1a0   :  { %v367_v56 = vmul.f32 %v5698_v11, %v314_v38  ;;  %v366_v41 = vmul.f32 %v5703_v20, %v313_v42  ;;  %v311_v45 = vmul.f32 %v5194_v32, %v5589_v13  ;;  %v412_v61 = vadd.f32 %v5706_v24, %v359_v16 }
 0x1a1   :  { %5203 = vrsqrt.f32 %v296_v49  ;;  %v363_v43 = vmul.f32 %v5698_v11, %v310_v53  ;;  %v362_v1 = vmul.f32 %v5703_v20, %v309_v58  ;;  %v312_v8 = vmul.f32 %v5194_v32, %v5591_v15  ;;  %v4717_v32 = vld [vmem:[#allocation7 + $0x224] ss:$16 sps:$4 sm:$0xff]  }
 0x1a2   :  { %v5738_v63 = vpop.eup %5195  ;;  %v364_v62 = vmul.f32 %v5688_v4, %v311_v45  ;;  %v420_v9 = vadd.f32 %v5706_v24, %v367_v56  ;;  %v419_v22 = vadd.f32 %v5711_v25, %v366_v41 }
 0x1a3   :  { %v416_v13 = vadd.f32 %v5706_v24, %v363_v43  ;;  %v415_v6 = vadd.f32 %v5711_v25, %v362_v1  ;;  %v318_v12 = vmul.f32 %v5738_v63, %v5585_v5  ;;  %v317_v14 = vmul.f32 %v5738_v63, %v5583_v3  ;;  %v4718_v43 = vld [vmem:[#allocation7 + $0x228] ss:$16 sps:$4 sm:$0xff]  }
 0x1a4   :  { %v5750_v18 = vpop.eup %5197  ;;  %v417_v15 = vadd.f32 %v5691_v10, %v364_v62  ;;  %v5770_v42 = vmul.f32 %v5714_v39, %v312_v8  ;;  %v369_v62 = vmul.f32 %v5714_v39, %v316_v37 }
 0x1a5   :  { %v5757_v26 = vpack.c.bf16 %v416_v13, %v412_v61  ;;  %v5759_v16 = vpack.c.bf16 %v415_v6, %v411_v46  ;;  %v371_v5 = vmul.f32 %v5698_v11, %v318_v12  ;;  %v370_v3 = vmul.f32 %v5703_v20, %v317_v14  ;;  %v4723_v61 = vld [vmem:[#allocation7 + $0x244] ss:$16 sps:$4 sm:$0xff]   ;;  %v4726_v46 = vld [vmem:[#allocation7 + $0x24c] ss:$16 sps:$4 sm:$0xff]  }
 0x1a6   :  { %v5763_v31 = vpop.eup %5199  ;;  %v322_v38 = vmul.f32 %v5750_v18, %v5599_v23  ;;  %v321_v50 = vmul.f32 %v5750_v18, %v5597_v21  ;;  %v5772_v49 = vpack.c.bf16 %v417_v15, %v413_v33  ;;  %v320_v23 = vmul.f32 %v5738_v63, %v5611_v44 }
 0x1a7   :  { %1259 = vmatprep.mubr.bf16.mxu0 %v5757_v26  ;;  %1405 = vmatprep.mubr.bf16.mxu1 %v5757_v26  ;;  %v424_v53 = vadd.f32 %v5706_v24, %v371_v5  ;;  %v326_v58 = vmul.f32 %v5763_v31, %v5605_v29  ;;  %v423_v21 = vadd.f32 %v5711_v25, %v370_v3  ;;  %v4715_v29 = vld [vmem:[#allocation7 + $0x220] ss:$16 sps:$4 sm:$0xff]   ;;  %v4724_v5 = vld [vmem:[#allocation7 + $0x248] ss:$16 sps:$4 sm:$0xff]  }
 0x1a8   :  { %1260 = vmatmul.mubr.bf16.vlgmr.msra.gmra.mrb[0].mxu0 %v5759_v16  ;;  %1406 = vmatmul.mubr.bf16.vlgmr.msra.gmra.mrb[0].mxu1 %v5759_v16  ;;  %v375_v33 = vmul.f32 %v5698_v11, %v322_v38  ;;  %v325_v56 = vmul.f32 %v5763_v31, %v5603_v27  ;;  %v374_v1 = vmul.f32 %v5703_v20, %v321_v50  ;;  %v4732_v38 = vld [vmem:[#allocation7 + $0x26c] ss:$16 sps:$4 sm:$0xff]  }
 0x1a9   :  { %v5787_v41 = vpop.eup %5201  ;;  %1301 = vmatpush1.bf16.msra.mxu0 %v4709_v35  ;;  %1447 = vmatpush1.bf16.msra.mxu1 %v4712_v28  ;;  %v5789_v45 = vpack.c.bf16 %v424_v53, %v420_v9  ;;  %v379_v44 = vmul.f32 %v5698_v11, %v326_v58  ;;  %v373_v35 = vmul.f32 %v5714_v39, %v320_v23  ;;  %v4721_v28 = vld [vmem:[#allocation7 + $0x240] ss:$16 sps:$4 sm:$0xff]  }
 0x1aa   :  { %1302 = vmatprep.subr.bf16.mxu0 %v4717_v32  ;;  %1448 = vmatprep.subr.bf16.mxu1 %v4720_v34  ;;  %v428_v8 = vadd.f32 %v5706_v24, %v375_v33  ;;  %v378_v27 = vmul.f32 %v5703_v20, %v325_v56  ;;  %v330_v12 = vmul.f32 %v5787_v41, %v5621_v57  ;;  %v4729_v34 = vld [vmem:[#allocation7 + $0x264] ss:$16 sps:$4 sm:$0xff]   ;;  %v4727_v33 = vld [vmem:[#allocation7 + $0x260] ss:$16 sps:$4 sm:$0xff]  }
 0x1ab   :  { %v5796_v13 = vpop.eup %5203  ;;  %1269 = vmatprep.mubr.bf16.mxu0 %v5789_v45  ;;  %1415 = vmatprep.mubr.bf16.mxu1 %v5789_v45  ;;  %v432_v6 = vadd.f32 %v5706_v24, %v379_v44  ;;  %v329_v14 = vmul.f32 %v5787_v41, %v5619_v54  ;;  %v5811_v3 = vpack.c.bf16 %v423_v21, %v419_v22  ;;  %v4738_v44 = vld [vmem:[#allocation7 + $0x28c] ss:$16 sps:$4 sm:$0xff]  }
 0x1ac   :  { %v431_v9 = vadd.f32 %v5711_v25, %v378_v27  ;;  %v334_v15 = vmul.f32 %v5796_v13, %v5627_v0  ;;  %v333_v37 = vmul.f32 %v5796_v13, %v5625_v60  ;;  %v427_v57 = vadd.f32 %v5711_v25, %v374_v1 }
 0x1ad   :  { %1303 = vmatpush1.bf16.msra.mxu0 %v4715_v29  ;;  %1449 = vmatpush1.bf16.msra.mxu1 %v4718_v43  ;;  %v383_v54 = vmul.f32 %v5698_v11, %v330_v12  ;;  %v5815_v32 = vpack.c.bf16 %v432_v6, %v428_v8  ;;  %v5822_v53 = vmul.f32 %v5703_v20, %v329_v14  ;;  %v4736_v6 = vld [vmem:[#allocation7 + $0x288] ss:$16 sps:$4 sm:$0xff]  }
 0x1ae   :  { %1304 = vmatprep.subr.bf16.mxu0 %v4723_v61  ;;  %1450 = vmatprep.subr.bf16.mxu1 %v4726_v46  ;;  %v387_v0 = vmul.f32 %v5698_v11, %v334_v15  ;;  %v386_v60 = vmul.f32 %v5703_v20, %v333_v37  ;;  %v5819_v50 = vpack.c.bf16 %v431_v9, %v427_v57  ;;  %v4730_v20 = vld [vmem:[#allocation7 + $0x268] ss:$16 sps:$4 sm:$0xff]   ;;  %v4739_v57 = vld [vmem:[#allocation7 + $0x2a0] ss:$16 sps:$4 sm:$0xff]  }
 0x1af   :  { %v422_v22 = vadd.f32 %v5730_v59, %v369_v62  ;;  %v426_v58 = vadd.f32 %v5730_v59, %v373_v35  ;;  %v436_v23 = vadd.f32 %v5706_v24, %v383_v54  ;;  %v315_v21 = vmul.f32 %v5708_v47, %v5561_v48  ;;  %v4733_v62 = vld [vmem:[#allocation7 + $0x280] ss:$16 sps:$4 sm:$0xff]   ;;  %v4742_v54 = vld [vmem:[#allocation7 + $0x2a8] ss:$16 sps:$4 sm:$0xff]  }
 0x1b0   :  { %1270 = vmatmul.mubr.bf16.gmra.mrb[4].mxu0 %v5811_v3  ;;  %1416 = vmatmul.mubr.bf16.gmra.mrb[4].mxu1 %v5811_v3  ;;  %v440_v11 = vadd.f32 %v5706_v24, %v387_v0  ;;  %v319_v29 = vmul.f32 %v5738_v63, %v5609_v40  ;;  %v324_v43 = vmul.f32 %v5750_v18, %v5631_v7  ;;  %v4735_v24 = vld [vmem:[#allocation7 + $0x284] ss:$16 sps:$4 sm:$0xff]  }
 0x1b1   :  { %1305 = vmatpush1.bf16.msra.mxu0 %v4721_v28  ;;  %1451 = vmatpush1.bf16.msra.mxu1 %v4724_v5  ;;  %v5832_v56 = vpack.c.bf16 %v426_v58, %v422_v22  ;;  %v439_v48 = vadd.f32 %v5711_v25, %v386_v60  ;;  %v368_v47 = vmul.f32 %v5688_v4, %v315_v21  ;;  %v4745_v21 = vld [vmem:[#allocation7 + $0x2c0] ss:$16 sps:$4 sm:$0xff]  }
 0x1b2   :  { %1279 = vmatprep.mubr.bf16.mxu0 %v5815_v32  ;;  %1425 = vmatprep.mubr.bf16.mxu1 %v5815_v32  ;;  %v5840_v1 = vpack.c.bf16 %v440_v11, %v436_v23  ;;  %v372_v61 = vmul.f32 %v5688_v4, %v319_v29  ;;  %v328_v40 = vmul.f32 %v5763_v31, %v5641_v19 }
 0x1b3   :  { %1306 = vmatprep.subr.bf16.mxu0 %v4729_v34  ;;  %1452 = vmatprep.subr.bf16.mxu1 %v4732_v38  ;;  %v377_v7 = vmul.f32 %v5714_v39, %v324_v43  ;;  %v421_v63 = vadd.f32 %v5691_v10, %v368_v47  ;;  %v323_v46 = vmul.f32 %v5750_v18, %v5617_v52  ;;  %v4750_v34 = vld [vmem:[#allocation7 + $0x2cc] ss:$16 sps:$4 sm:$0xff]   ;;  %v4765_v47 = vld [vmem:[#allocation7 + $0x324] ss:$16 sps:$4 sm:$0xff]  }
 0x1b4   :  { %v327_v8 = vmul.f32 %v5763_v31, %v5639_v17  ;;  %v332_v27 = vmul.f32 %v5787_v41, %v5655_v36  ;;  %v425_v12 = vadd.f32 %v5691_v10, %v372_v61  ;;  %v381_v19 = vmul.f32 %v5714_v39, %v328_v40  ;;  %v4741_v36 = vld [vmem:[#allocation7 + $0x2a4] ss:$16 sps:$4 sm:$0xff]   ;;  %v4744_v31 = vld [vmem:[#allocation7 + $0x2ac] ss:$16 sps:$4 sm:$0xff]   ;;  %v4763_v40 = vld [vmem:[#allocation7 + $0x320] ss:$16 sps:$4 sm:$0xff]  }
 0x1b5   :  { %1307 = vmatpush1.bf16.msra.mxu0 %v4727_v33  ;;  %1453 = vmatpush1.bf16.msra.mxu1 %v4730_v20  ;;  %v430_v14 = vadd.f32 %v5730_v59, %v377_v7  ;;  %v376_v52 = vmul.f32 %v5688_v4, %v323_v46  ;;  %v336_v17 = vmul.f32 %v5796_v13, %v5665_v55  ;;  %v4748_v33 = vld [vmem:[#allocation7 + $0x2c8] ss:$16 sps:$4 sm:$0xff]   ;;  %v4768_v61 = vld [vmem:[#allocation7 + $0x32c] ss:$16 sps:$4 sm:$0xff]  }
 0x1b6   :  { %1308 = vmatprep.subr.bf16.mxu0 %v4735_v24  ;;  %1454 = vmatprep.subr.bf16.mxu1 %v4738_v44  ;;  %v380_v18 = vmul.f32 %v5688_v4, %v327_v8  ;;  %v5862_v9 = vpack.c.bf16 %v425_v12, %v421_v63  ;;  %v434_v15 = vadd.f32 %v5730_v59, %v381_v19  ;;  %v4754_v24 = vld [vmem:[#allocation7 + $0x2e8] ss:$16 sps:$4 sm:$0xff]   ;;  %v4759_v44 = vld [vmem:[#allocation7 + $0x304] ss:$16 sps:$4 sm:$0xff]   ;;  %v4774_v46 = vld [vmem:[#allocation7 + $0x34c] ss:$16 sps:$4 sm:$0xff]  }
 0x1b7   :  { %v385_v37 = vmul.f32 %v5714_v39, %v332_v27  ;;  %v331_v35 = vmul.f32 %v5787_v41, %v5653_v30  ;;  %v429_v28 = vadd.f32 %v5691_v10, %v376_v52  ;;  %v389_v55 = vmul.f32 %v5714_v39, %v336_v17  ;;  %v4747_v41 = vld [vmem:[#allocation7 + $0x2c4] ss:$16 sps:$4 sm:$0xff]   ;;  %v4766_v7 = vld [vmem:[#allocation7 + $0x328] ss:$16 sps:$4 sm:$0xff]   ;;  %v4769_v8 = vld [vmem:[#allocation7 + $0x340] ss:$16 sps:$4 sm:$0xff]  }
 0x1b8   :  { %1280 = vmatmul.mubr.bf16.gmra.mrb[8].mxu0 %v5819_v50  ;;  %1426 = vmatmul.mubr.bf16.gmra.mrb[8].mxu1 %v5819_v50  ;;  %v433_v5 = vadd.f32 %v5691_v10, %v380_v18  ;;  %v5873_v0 = vpack.c.bf16 %v434_v15, %v430_v14  ;;  %v335_v30 = vmul.f32 %v5796_v13, %v5663_v51  ;;  %v4771_v63 = vld [vmem:[#allocation7 + $0x344] ss:$16 sps:$4 sm:$0xff]   ;;  %v4772_v27 = vld [vmem:[#allocation7 + $0x348] ss:$16 sps:$4 sm:$0xff]   ;;  %v4775_v12 = vld [vmem:[#allocation7 + $0x360] ss:$16 sps:$4 sm:$0xff]  }
 0x1b9   :  { %1309 = vmatpush1.bf16.msra.mxu0 %v4733_v62  ;;  %1455 = vmatpush1.bf16.msra.mxu1 %v4736_v6  ;;  %v438_v60 = vadd.f32 %v5730_v59, %v385_v37  ;;  %v442_v39 = vadd.f32 %v5730_v59, %v389_v55  ;;  %v384_v22 = vmul.f32 %v5688_v4, %v331_v35  ;;  %v4777_v62 = vld [vmem:[#allocation7 + $0x364] ss:$16 sps:$4 sm:$0xff]   ;;  %v4780_v6 = vld [vmem:[#allocation7 + $0x36c] ss:$16 sps:$4 sm:$0xff]   ;;  %v4778_v19 = vld [vmem:[#allocation7 + $0x368] ss:$16 sps:$4 sm:$0xff]  }
 0x1ba   :  { %1289 = vmatprep.mubr.bf16.mxu0 %v5840_v1  ;;  %1435 = vmatprep.mubr.bf16.mxu1 %v5840_v1  ;;  %v5880_v38 = vpack.c.bf16 %v433_v5, %v429_v28  ;;  %v388_v58 = vmul.f32 %v5688_v4, %v335_v30  ;;  %v435_v23 = vadd.f32 %v5711_v25, %v5822_v53  ;;  %v4753_v25 = vld [vmem:[#allocation7 + $0x2e4] ss:$16 sps:$4 sm:$0xff]   ;;  %v4756_v53 = vld [vmem:[#allocation7 + $0x2ec] ss:$16 sps:$4 sm:$0xff]   ;;  %v4781_v18 = vld [vmem:[#allocation7 + $0x380] ss:$16 sps:$4 sm:$0xff]  }
 0x1bb   :  { %1310 = vmatprep.subr.bf16.mxu0 %v4741_v36  ;;  %1456 = vmatprep.subr.bf16.mxu1 %v4744_v31  ;;  %v418_v51 = vadd.f32 %v5730_v59, %v5770_v42  ;;  %v5889_v13 = vpack.c.bf16 %v442_v39, %v438_v60  ;;  %v437_v11 = vadd.f32 %v5691_v10, %v384_v22  ;;  %v4783_v14 = vld [vmem:[#allocation7 + $0x384] ss:$16 sps:$4 sm:$0xff]   ;;  %v4786_v52 = vld [vmem:[#allocation7 + $0x38c] ss:$16 sps:$4 sm:$0xff]   ;;  %v4784_v17 = vld [vmem:[#allocation7 + $0x388] ss:$16 sps:$4 sm:$0xff]  }
 0x1bc   :  { %v441_v20 = vadd.f32 %v5691_v10, %v388_v58  ;;  %v5893_v29 = vpack.c.bf16 %v439_v48, %v435_v23  ;;  %v414_v4 = vadd.f32 %v5730_v59, %v5736_v2  ;;  %v4751_v10 = vld [vmem:[#allocation7 + $0x2e0] ss:$16 sps:$4 sm:$0xff]   ;;  %v4762_v59 = vld [vmem:[#allocation7 + $0x30c] ss:$16 sps:$4 sm:$0xff]   ;;  %v4760_v48 = vld [vmem:[#allocation7 + $0x308] ss:$16 sps:$4 sm:$0xff]  }
 0x1bd   :  { %1311 = vmatpush1.bf16.msra.mxu0 %v4739_v57  ;;  %1457 = vmatpush1.bf16.msra.mxu1 %v4742_v54  ;;  %v4757_v2 = vld [vmem:[#allocation7 + $0x300] ss:$16 sps:$4 sm:$0xff]   ;;  %v4789_v36 = vld [vmem:[#allocation7 + $0x3a4] ss:$16 sps:$4 sm:$0xff]   ;;  %v4792_v31 = vld [vmem:[#allocation7 + $0x3ac] ss:$16 sps:$4 sm:$0xff]  }
 0x1be   :  { %1312 = vmatprep.subr.bf16.mxu0 %v4747_v41  ;;  %1458 = vmatprep.subr.bf16.mxu1 %v4750_v34  ;;  %v5897_v42 = vpack.c.bf16 %v441_v20, %v437_v11  ;;  %v5901_v43 = vpack.c.bf16 %v418_v51, %v414_v4  ;;  %v4787_v15 = vld [vmem:[#allocation7 + $0x3a0] ss:$16 sps:$4 sm:$0xff]   ;;  %v4790_v37 = vld [vmem:[#allocation7 + $0x3a8] ss:$16 sps:$4 sm:$0xff]   ;;  %v4795_v35 = vld [vmem:[#allocation7 + $0x3c4] ss:$16 sps:$4 sm:$0xff]  }
 0x1bf   :  { %v4798_v28 = vld [vmem:[#allocation7 + $0x3cc] ss:$16 sps:$4 sm:$0xff]   ;;  %v4793_v5 = vld [vmem:[#allocation7 + $0x3c0] ss:$16 sps:$4 sm:$0xff]   ;;  %v4796_v55 = vld [vmem:[#allocation7 + $0x3c8] ss:$16 sps:$4 sm:$0xff]  }
 0x1c0   :  { %1290 = vmatmul.mubr.bf16.gmra.mrb[12].mxu0 %v5893_v29  ;;  %1436 = vmatmul.mubr.bf16.gmra.mrb[12].mxu1 %v5893_v29  ;;  %v4801_v57 = vld [vmem:[#allocation7 + $0x3e4] ss:$16 sps:$4 sm:$0xff]   ;;  %v4804_v54 = vld [vmem:[#allocation7 + $0x3ec] ss:$16 sps:$4 sm:$0xff]   ;;  %v4799_v60 = vld [vmem:[#allocation7 + $0x3e0] ss:$16 sps:$4 sm:$0xff]  }
 0x1c1   :  { %1313 = vmatpush1.bf16.msra.mxu0 %v4745_v21  ;;  %1459 = vmatpush1.bf16.msra.mxu1 %v4748_v33  ;;  %v4802_v30 = vld [vmem:[#allocation7 + $0x3e8] ss:$16 sps:$4 sm:$0xff]   ;;  %v4807_v41 = vld [vmem:[#allocation8 + $0x4] ss:$16 sps:$4 sm:$0xff]   ;;  %v4810_v34 = vld [vmem:[#allocation8 + $0xc] ss:$16 sps:$4 sm:$0xff]  }
 0x1c2   :  { %1332 = vmatprep.mubr.bf16.mxu0 %v5901_v43  ;;  %1478 = vmatprep.mubr.bf16.mxu1 %v5901_v43  ;;  %v4805_v39 = vld [vmem:[#allocation8] ss:$16 sps:$4 sm:$0xff]   ;;  %v4808_v22 = vld [vmem:[#allocation8 + $0x8] ss:$16 sps:$4 sm:$0xff]   ;;  %v4813_v58 = vld [vmem:[#allocation8 + $0x24] ss:$16 sps:$4 sm:$0xff]  }
 0x1c3   :  { %1314 = vmatprep.subr.bf16.mxu0 %v4753_v25  ;;  %1460 = vmatprep.subr.bf16.mxu1 %v4756_v53  ;;  %v4816_v23 = vld [vmem:[#allocation8 + $0x2c] ss:$16 sps:$4 sm:$0xff]   ;;  %v4811_v51 = vld [vmem:[#allocation8 + $0x20] ss:$16 sps:$4 sm:$0xff]   ;;  %v4814_v11 = vld [vmem:[#allocation8 + $0x28] ss:$16 sps:$4 sm:$0xff]  }
 0x1c4   :  { %v4819_v21 = vld [vmem:[#allocation8 + $0x44] ss:$16 sps:$4 sm:$0xff]   ;;  %v4822_v33 = vld [vmem:[#allocation8 + $0x4c] ss:$16 sps:$4 sm:$0xff]   ;;  %v4817_v20 = vld [vmem:[#allocation8 + $0x40] ss:$16 sps:$4 sm:$0xff]  }
 0x1c5   :  { %1315 = vmatpush1.bf16.msra.mxu0 %v4751_v10  ;;  %1461 = vmatpush1.bf16.msra.mxu1 %v4754_v24  ;;  %v4820_v4 = vld [vmem:[#allocation8 + $0x48] ss:$16 sps:$4 sm:$0xff]   ;;  %v4825_v25 = vld [vmem:[#allocation8 + $0x64] ss:$16 sps:$4 sm:$0xff]   ;;  %v4828_v53 = vld [vmem:[#allocation8 + $0x6c] ss:$16 sps:$4 sm:$0xff]  }
 0x1c6   :  { %1316 = vmatprep.subr.bf16.mxu0 %v4759_v44  ;;  %1462 = vmatprep.subr.bf16.mxu1 %v4762_v59  ;;  %v4823_v10 = vld [vmem:[#allocation8 + $0x60] ss:$16 sps:$4 sm:$0xff]   ;;  %v4826_v24 = vld [vmem:[#allocation8 + $0x68] ss:$16 sps:$4 sm:$0xff]   ;;  %v4831_v44 = vld [vmem:[#allocation8 + $0x84] ss:$16 sps:$4 sm:$0xff]  }
 0x1c7   :  { %v4834_v59 = vld [vmem:[#allocation8 + $0x8c] ss:$16 sps:$4 sm:$0xff]  }
 0x1c9   :  { %1317 = vmatpush1.bf16.msra.mxu0 %v4757_v2  ;;  %1463 = vmatpush1.bf16.msra.mxu1 %v4760_v48  ;;  %v4829_v2 = vld [vmem:[#allocation8 + $0x80] ss:$16 sps:$4 sm:$0xff]   ;;  %v4832_v48 = vld [vmem:[#allocation8 + $0x88] ss:$16 sps:$4 sm:$0xff]  }
 0x1ca   :  { %1318 = vmatprep.subr.bf16.mxu0 %v4765_v47  ;;  %1464 = vmatprep.subr.bf16.mxu1 %v4768_v61  ;;  %v4837_v47 = vld [vmem:[#allocation8 + $0xa4] ss:$16 sps:$4 sm:$0xff]   ;;  %v4840_v61 = vld [vmem:[#allocation8 + $0xac] ss:$16 sps:$4 sm:$0xff]  }
 0x1cd   :  { %1319 = vmatpush1.bf16.msra.mxu0 %v4763_v40  ;;  %1465 = vmatpush1.bf16.msra.mxu1 %v4766_v7  ;;  %v4835_v40 = vld [vmem:[#allocation8 + $0xa0] ss:$16 sps:$4 sm:$0xff]   ;;  %v4838_v7 = vld [vmem:[#allocation8 + $0xa8] ss:$16 sps:$4 sm:$0xff]  }
 0x1ce   :  { %1320 = vmatprep.subr.bf16.mxu0 %v4771_v63  ;;  %1466 = vmatprep.subr.bf16.mxu1 %v4774_v46  ;;  %v4843_v63 = vld [vmem:[#allocation8 + $0xc4] ss:$16 sps:$4 sm:$0xff]   ;;  %v4846_v46 = vld [vmem:[#allocation8 + $0xcc] ss:$16 sps:$4 sm:$0xff]  }
 0x1d1   :  { %1321 = vmatpush1.bf16.msra.mxu0 %v4769_v8  ;;  %1467 = vmatpush1.bf16.msra.mxu1 %v4772_v27  ;;  %v4841_v8 = vld [vmem:[#allocation8 + $0xc0] ss:$16 sps:$4 sm:$0xff]   ;;  %v4844_v27 = vld [vmem:[#allocation8 + $0xc8] ss:$16 sps:$4 sm:$0xff]  }
 0x1d2   :  { %1322 = vmatprep.subr.bf16.mxu0 %v4777_v62  ;;  %1468 = vmatprep.subr.bf16.mxu1 %v4780_v6  ;;  %v4849_v62 = vld [vmem:[#allocation8 + $0xe4] ss:$16 sps:$4 sm:$0xff]   ;;  %v4852_v6 = vld [vmem:[#allocation8 + $0xec] ss:$16 sps:$4 sm:$0xff]  }
 0x1d5   :  { %1323 = vmatpush1.bf16.msra.mxu0 %v4775_v12  ;;  %1469 = vmatpush1.bf16.msra.mxu1 %v4778_v19  ;;  %v4847_v12 = vld [vmem:[#allocation8 + $0xe0] ss:$16 sps:$4 sm:$0xff]   ;;  %v4850_v19 = vld [vmem:[#allocation8 + $0xe8] ss:$16 sps:$4 sm:$0xff]  }
 0x1d6   :  { %1324 = vmatprep.subr.bf16.mxu0 %v4783_v14  ;;  %1470 = vmatprep.subr.bf16.mxu1 %v4786_v52  ;;  %v4855_v14 = vld [vmem:[#allocation8 + $0x104] ss:$16 sps:$4 sm:$0xff]   ;;  %v4858_v52 = vld [vmem:[#allocation8 + $0x10c] ss:$16 sps:$4 sm:$0xff]  }
 0x1d9   :  { %1325 = vmatpush1.bf16.msra.mxu0 %v4781_v18  ;;  %1471 = vmatpush1.bf16.msra.mxu1 %v4784_v17  ;;  %v4853_v18 = vld [vmem:[#allocation8 + $0x100] ss:$16 sps:$4 sm:$0xff]   ;;  %v4856_v17 = vld [vmem:[#allocation8 + $0x108] ss:$16 sps:$4 sm:$0xff]  }
 0x1da   :  { %1326 = vmatprep.subr.bf16.mxu0 %v4789_v36  ;;  %1472 = vmatprep.subr.bf16.mxu1 %v4792_v31  ;;  %v4861_v36 = vld [vmem:[#allocation8 + $0x124] ss:$16 sps:$4 sm:$0xff]   ;;  %v4864_v31 = vld [vmem:[#allocation8 + $0x12c] ss:$16 sps:$4 sm:$0xff]  }
 0x1dd   :  { %1327 = vmatpush1.bf16.msra.mxu0 %v4787_v15  ;;  %1473 = vmatpush1.bf16.msra.mxu1 %v4790_v37  ;;  %v4859_v15 = vld [vmem:[#allocation8 + $0x120] ss:$16 sps:$4 sm:$0xff]   ;;  %v4862_v37 = vld [vmem:[#allocation8 + $0x128] ss:$16 sps:$4 sm:$0xff]  }
 0x1de   :  { %1328 = vmatprep.subr.bf16.mxu0 %v4795_v35  ;;  %1474 = vmatprep.subr.bf16.mxu1 %v4798_v28  ;;  %v4867_v35 = vld [vmem:[#allocation8 + $0x144] ss:$16 sps:$4 sm:$0xff]   ;;  %v4870_v28 = vld [vmem:[#allocation8 + $0x14c] ss:$16 sps:$4 sm:$0xff]  }
 0x1e1   :  { %1329 = vmatpush1.bf16.msra.mxu0 %v4793_v5  ;;  %1475 = vmatpush1.bf16.msra.mxu1 %v4796_v55  ;;  %v4865_v5 = vld [vmem:[#allocation8 + $0x140] ss:$16 sps:$4 sm:$0xff]   ;;  %v4868_v55 = vld [vmem:[#allocation8 + $0x148] ss:$16 sps:$4 sm:$0xff]  }
 0x1e2   :  { %1330 = vmatprep.subr.bf16.mxu0 %v4801_v57  ;;  %1476 = vmatprep.subr.bf16.mxu1 %v4804_v54  ;;  %v4873_v57 = vld [vmem:[#allocation8 + $0x164] ss:$16 sps:$4 sm:$0xff]   ;;  %v4876_v54 = vld [vmem:[#allocation8 + $0x16c] ss:$16 sps:$4 sm:$0xff]  }
 0x1e5   :  { %1331 = vmatpush1.bf16.msra.mxu0 %v4799_v60  ;;  %1477 = vmatpush1.bf16.msra.mxu1 %v4802_v30  ;;  %v4871_v60 = vld [vmem:[#allocation8 + $0x160] ss:$16 sps:$4 sm:$0xff]   ;;  %v4874_v30 = vld [vmem:[#allocation8 + $0x168] ss:$16 sps:$4 sm:$0xff]  }
 0x1e6   :  { %2399 = vmatprep.subr.bf16.mxu0 %v4807_v41  ;;  %2545 = vmatprep.subr.bf16.mxu1 %v4810_v34  ;;  %v4879_v41 = vld [vmem:[#allocation8 + $0x184] ss:$16 sps:$4 sm:$0xff]   ;;  %v4882_v34 = vld [vmem:[#allocation8 + $0x18c] ss:$16 sps:$4 sm:$0xff]  }
 0x1e8   :  { %1333 = vmatmul.mubr.bf16.vlgmr.msra.gmra.mrb[0].mxu0 %v5772_v49  ;;  %1479 = vmatmul.mubr.bf16.vlgmr.msra.gmra.mrb[0].mxu1 %v5772_v49 }
 0x1e9   :  { %1342 = vmatprep.mubr.bf16.mxu0 %v5832_v56  ;;  %1488 = vmatprep.mubr.bf16.mxu1 %v5832_v56 }
 0x1ea   :  { %2400 = vmatpush1.bf16.msra.mxu0 %v4805_v39  ;;  %2546 = vmatpush1.bf16.msra.mxu1 %v4808_v22  ;;  %v4877_v39 = vld [vmem:[#allocation8 + $0x180] ss:$16 sps:$4 sm:$0xff]   ;;  %v4880_v22 = vld [vmem:[#allocation8 + $0x188] ss:$16 sps:$4 sm:$0xff]  }
 0x1eb   :  { %2401 = vmatprep.subr.bf16.mxu0 %v4813_v58  ;;  %2547 = vmatprep.subr.bf16.mxu1 %v4816_v23  ;;  %v4885_v58 = vld [vmem:[#allocation8 + $0x1a4] ss:$16 sps:$4 sm:$0xff]   ;;  %v4888_v23 = vld [vmem:[#allocation8 + $0x1ac] ss:$16 sps:$4 sm:$0xff]  }
 0x1ee   :  { %2402 = vmatpush1.bf16.msra.mxu0 %v4811_v51  ;;  %2548 = vmatpush1.bf16.msra.mxu1 %v4814_v11  ;;  %v4883_v51 = vld [vmem:[#allocation8 + $0x1a0] ss:$16 sps:$4 sm:$0xff]   ;;  %v4886_v11 = vld [vmem:[#allocation8 + $0x1a8] ss:$16 sps:$4 sm:$0xff]  }
 0x1ef   :  { %2403 = vmatprep.subr.bf16.mxu0 %v4819_v21  ;;  %2549 = vmatprep.subr.bf16.mxu1 %v4822_v33  ;;  %v4891_v21 = vld [vmem:[#allocation8 + $0x1c4] ss:$16 sps:$4 sm:$0xff]   ;;  %v4894_v33 = vld [vmem:[#allocation8 + $0x1cc] ss:$16 sps:$4 sm:$0xff]  }
 0x1f0   :  { %1343 = vmatmul.mubr.bf16.gmra.mrb[4].mxu0 %v5862_v9  ;;  %1489 = vmatmul.mubr.bf16.gmra.mrb[4].mxu1 %v5862_v9 }
 0x1f1   :  { %1352 = vmatprep.mubr.bf16.mxu0 %v5873_v0  ;;  %1498 = vmatprep.mubr.bf16.mxu1 %v5873_v0 }
 0x1f2   :  { %2404 = vmatpush1.bf16.msra.mxu0 %v4817_v20  ;;  %2550 = vmatpush1.bf16.msra.mxu1 %v4820_v4  ;;  %v4889_v20 = vld [vmem:[#allocation8 + $0x1c0] ss:$16 sps:$4 sm:$0xff]   ;;  %v4892_v4 = vld [vmem:[#allocation8 + $0x1c8] ss:$16 sps:$4 sm:$0xff]  }
 0x1f3   :  { %2405 = vmatprep.subr.bf16.mxu0 %v4825_v25  ;;  %2551 = vmatprep.subr.bf16.mxu1 %v4828_v53  ;;  %v4897_v25 = vld [vmem:[#allocation8 + $0x1e4] ss:$16 sps:$4 sm:$0xff]   ;;  %v4900_v53 = vld [vmem:[#allocation8 + $0x1ec] ss:$16 sps:$4 sm:$0xff]  }
 0x1f6   :  { %2406 = vmatpush1.bf16.msra.mxu0 %v4823_v10  ;;  %2552 = vmatpush1.bf16.msra.mxu1 %v4826_v24  ;;  %v4895_v10 = vld [vmem:[#allocation8 + $0x1e0] ss:$16 sps:$4 sm:$0xff]   ;;  %v4898_v24 = vld [vmem:[#allocation8 + $0x1e8] ss:$16 sps:$4 sm:$0xff]  }
 0x1f7   :  { %2407 = vmatprep.subr.bf16.mxu0 %v4831_v44  ;;  %2553 = vmatprep.subr.bf16.mxu1 %v4834_v59  ;;  %v4903_v44 = vld [vmem:[#allocation8 + $0x204] ss:$16 sps:$4 sm:$0xff]   ;;  %v4906_v59 = vld [vmem:[#allocation8 + $0x20c] ss:$16 sps:$4 sm:$0xff]  }
 0x1f8   :  { %1353 = vmatmul.mubr.bf16.gmra.mrb[8].mxu0 %v5880_v38  ;;  %1499 = vmatmul.mubr.bf16.gmra.mrb[8].mxu1 %v5880_v38 }
 0x1f9   :  { %1362 = vmatprep.mubr.bf16.mxu0 %v5889_v13  ;;  %1508 = vmatprep.mubr.bf16.mxu1 %v5889_v13 }
 0x1fa   :  { %2408 = vmatpush1.bf16.msra.mxu0 %v4829_v2  ;;  %2554 = vmatpush1.bf16.msra.mxu1 %v4832_v48  ;;  %v4901_v2 = vld [vmem:[#allocation8 + $0x200] ss:$16 sps:$4 sm:$0xff]   ;;  %v4904_v48 = vld [vmem:[#allocation8 + $0x208] ss:$16 sps:$4 sm:$0xff]  }
 0x1fb   :  { %2409 = vmatprep.subr.bf16.mxu0 %v4837_v47  ;;  %2555 = vmatprep.subr.bf16.mxu1 %v4840_v61  ;;  %v4909_v47 = vld [vmem:[#allocation8 + $0x224] ss:$16 sps:$4 sm:$0xff]   ;;  %v4912_v61 = vld [vmem:[#allocation8 + $0x22c] ss:$16 sps:$4 sm:$0xff]  }
 0x1fe   :  { %2410 = vmatpush1.bf16.msra.mxu0 %v4835_v40  ;;  %2556 = vmatpush1.bf16.msra.mxu1 %v4838_v7  ;;  %v4907_v40 = vld [vmem:[#allocation8 + $0x220] ss:$16 sps:$4 sm:$0xff]   ;;  %v4910_v7 = vld [vmem:[#allocation8 + $0x228] ss:$16 sps:$4 sm:$0xff]  }
 0x1ff   :  { %2411 = vmatprep.subr.bf16.mxu0 %v4843_v63  ;;  %2557 = vmatprep.subr.bf16.mxu1 %v4846_v46  ;;  %v4915_v63 = vld [vmem:[#allocation8 + $0x244] ss:$16 sps:$4 sm:$0xff]   ;;  %v4918_v46 = vld [vmem:[#allocation8 + $0x24c] ss:$16 sps:$4 sm:$0xff]  }
 0x200   :  { %1363 = vmatmul.mubr.bf16.gmra.mrb[12].mxu0 %v5897_v42  ;;  %1509 = vmatmul.mubr.bf16.gmra.mrb[12].mxu1 %v5897_v42 }
 0x201   :  { %2431 = vmatprep.mubr.bf16.mxu0 %v5757_v26  ;;  %2577 = vmatprep.mubr.bf16.mxu1 %v5757_v26 }
 0x202   :  { %2412 = vmatpush1.bf16.msra.mxu0 %v4841_v8  ;;  %2558 = vmatpush1.bf16.msra.mxu1 %v4844_v27  ;;  %v4913_v8 = vld [vmem:[#allocation8 + $0x240] ss:$16 sps:$4 sm:$0xff]   ;;  %v4916_v27 = vld [vmem:[#allocation8 + $0x248] ss:$16 sps:$4 sm:$0xff]  }
 0x203   :  { %2413 = vmatprep.subr.bf16.mxu0 %v4849_v62  ;;  %2559 = vmatprep.subr.bf16.mxu1 %v4852_v6  ;;  %v4921_v62 = vld [vmem:[#allocation8 + $0x264] ss:$16 sps:$4 sm:$0xff]   ;;  %v4924_v6 = vld [vmem:[#allocation8 + $0x26c] ss:$16 sps:$4 sm:$0xff]  }
 0x206   :  { %2414 = vmatpush1.bf16.msra.mxu0 %v4847_v12  ;;  %2560 = vmatpush1.bf16.msra.mxu1 %v4850_v19  ;;  %v4919_v12 = vld [vmem:[#allocation8 + $0x260] ss:$16 sps:$4 sm:$0xff]   ;;  %v4922_v19 = vld [vmem:[#allocation8 + $0x268] ss:$16 sps:$4 sm:$0xff]  }
 0x207   :  { %2415 = vmatprep.subr.bf16.mxu0 %v4855_v14  ;;  %2561 = vmatprep.subr.bf16.mxu1 %v4858_v52  ;;  %v4927_v14 = vld [vmem:[#allocation8 + $0x284] ss:$16 sps:$4 sm:$0xff]   ;;  %v4930_v52 = vld [vmem:[#allocation8 + $0x28c] ss:$16 sps:$4 sm:$0xff]  }
 0x20a   :  { %2416 = vmatpush1.bf16.msra.mxu0 %v4853_v18  ;;  %2562 = vmatpush1.bf16.msra.mxu1 %v4856_v17  ;;  %v4925_v18 = vld [vmem:[#allocation8 + $0x280] ss:$16 sps:$4 sm:$0xff]   ;;  %v4928_v17 = vld [vmem:[#allocation8 + $0x288] ss:$16 sps:$4 sm:$0xff]  }
 0x20b   :  { %2417 = vmatprep.subr.bf16.mxu0 %v4861_v36  ;;  %2563 = vmatprep.subr.bf16.mxu1 %v4864_v31  ;;  %v4933_v36 = vld [vmem:[#allocation8 + $0x2a4] ss:$16 sps:$4 sm:$0xff]   ;;  %v4936_v31 = vld [vmem:[#allocation8 + $0x2ac] ss:$16 sps:$4 sm:$0xff]  }
 0x20e   :  { %2418 = vmatpush1.bf16.msra.mxu0 %v4859_v15  ;;  %2564 = vmatpush1.bf16.msra.mxu1 %v4862_v37  ;;  %v4931_v15 = vld [vmem:[#allocation8 + $0x2a0] ss:$16 sps:$4 sm:$0xff]   ;;  %v4934_v37 = vld [vmem:[#allocation8 + $0x2a8] ss:$16 sps:$4 sm:$0xff]  }
 0x20f   :  { %2419 = vmatprep.subr.bf16.mxu0 %v4867_v35  ;;  %2565 = vmatprep.subr.bf16.mxu1 %v4870_v28  ;;  %v4939_v35 = vld [vmem:[#allocation8 + $0x2c4] ss:$16 sps:$4 sm:$0xff]   ;;  %v4942_v28 = vld [vmem:[#allocation8 + $0x2cc] ss:$16 sps:$4 sm:$0xff]  }
 0x212   :  { %2420 = vmatpush1.bf16.msra.mxu0 %v4865_v5  ;;  %2566 = vmatpush1.bf16.msra.mxu1 %v4868_v55  ;;  %v4937_v5 = vld [vmem:[#allocation8 + $0x2c0] ss:$16 sps:$4 sm:$0xff]   ;;  %v4940_v55 = vld [vmem:[#allocation8 + $0x2c8] ss:$16 sps:$4 sm:$0xff]  }
 0x213   :  { %2421 = vmatprep.subr.bf16.mxu0 %v4873_v57  ;;  %2567 = vmatprep.subr.bf16.mxu1 %v4876_v54  ;;  %v4945_v57 = vld [vmem:[#allocation8 + $0x2e4] ss:$16 sps:$4 sm:$0xff]   ;;  %v4948_v54 = vld [vmem:[#allocation8 + $0x2ec] ss:$16 sps:$4 sm:$0xff]  }
 0x216   :  { %2422 = vmatpush1.bf16.msra.mxu0 %v4871_v60  ;;  %2568 = vmatpush1.bf16.msra.mxu1 %v4874_v30  ;;  %v4943_v60 = vld [vmem:[#allocation8 + $0x2e0] ss:$16 sps:$4 sm:$0xff]   ;;  %v4946_v30 = vld [vmem:[#allocation8 + $0x2e8] ss:$16 sps:$4 sm:$0xff]  }
 0x217   :  { %2423 = vmatprep.subr.bf16.mxu0 %v4879_v41  ;;  %2569 = vmatprep.subr.bf16.mxu1 %v4882_v34  ;;  %v4951_v41 = vld [vmem:[#allocation8 + $0x304] ss:$16 sps:$4 sm:$0xff]   ;;  %v4954_v34 = vld [vmem:[#allocation8 + $0x30c] ss:$16 sps:$4 sm:$0xff]  }
 0x21a   :  { %2424 = vmatpush1.bf16.msra.mxu0 %v4877_v39  ;;  %2570 = vmatpush1.bf16.msra.mxu1 %v4880_v22  ;;  %v4949_v39 = vld [vmem:[#allocation8 + $0x300] ss:$16 sps:$4 sm:$0xff]   ;;  %v4952_v22 = vld [vmem:[#allocation8 + $0x308] ss:$16 sps:$4 sm:$0xff]  }
 0x21b   :  { %2425 = vmatprep.subr.bf16.mxu0 %v4885_v58  ;;  %2571 = vmatprep.subr.bf16.mxu1 %v4888_v23  ;;  %v4957_v58 = vld [vmem:[#allocation8 + $0x324] ss:$16 sps:$4 sm:$0xff]   ;;  %v4960_v23 = vld [vmem:[#allocation8 + $0x32c] ss:$16 sps:$4 sm:$0xff]  }
 0x21e   :  { %2426 = vmatpush1.bf16.msra.mxu0 %v4883_v51  ;;  %2572 = vmatpush1.bf16.msra.mxu1 %v4886_v11  ;;  %v4955_v51 = vld [vmem:[#allocation8 + $0x320] ss:$16 sps:$4 sm:$0xff]   ;;  %v4958_v11 = vld [vmem:[#allocation8 + $0x328] ss:$16 sps:$4 sm:$0xff]  }
 0x21f   :  { %2427 = vmatprep.subr.bf16.mxu0 %v4891_v21  ;;  %2573 = vmatprep.subr.bf16.mxu1 %v4894_v33  ;;  %v4963_v21 = vld [vmem:[#allocation8 + $0x344] ss:$16 sps:$4 sm:$0xff]   ;;  %v4966_v33 = vld [vmem:[#allocation8 + $0x34c] ss:$16 sps:$4 sm:$0xff]  }
 0x222   :  { %2428 = vmatpush1.bf16.msra.mxu0 %v4889_v20  ;;  %2574 = vmatpush1.bf16.msra.mxu1 %v4892_v4  ;;  %v4961_v20 = vld [vmem:[#allocation8 + $0x340] ss:$16 sps:$4 sm:$0xff]   ;;  %v4964_v4 = vld [vmem:[#allocation8 + $0x348] ss:$16 sps:$4 sm:$0xff]  }
 0x223   :  { %2429 = vmatprep.subr.bf16.mxu0 %v4897_v25  ;;  %2575 = vmatprep.subr.bf16.mxu1 %v4900_v53  ;;  %v4969_v25 = vld [vmem:[#allocation8 + $0x364] ss:$16 sps:$4 sm:$0xff]   ;;  %v4972_v53 = vld [vmem:[#allocation8 + $0x36c] ss:$16 sps:$4 sm:$0xff]  }
 0x226   :  { %2430 = vmatpush1.bf16.msra.mxu0 %v4895_v10  ;;  %2576 = vmatpush1.bf16.msra.mxu1 %v4898_v24  ;;  %v4967_v10 = vld [vmem:[#allocation8 + $0x360] ss:$16 sps:$4 sm:$0xff]   ;;  %v4970_v24 = vld [vmem:[#allocation8 + $0x368] ss:$16 sps:$4 sm:$0xff]  }
 0x227   :  { %2472 = vmatprep.subr.bf16.mxu0 %v4903_v44  ;;  %2618 = vmatprep.subr.bf16.mxu1 %v4906_v59  ;;  %v4975_v44 = vld [vmem:[#allocation8 + $0x384] ss:$16 sps:$4 sm:$0xff]   ;;  %v4978_v59 = vld [vmem:[#allocation8 + $0x38c] ss:$16 sps:$4 sm:$0xff]  }
 0x229   :  { %2432 = vmatmul.mubr.bf16.vlgmr.msra.gmra.mrb[16].mxu0 %v5759_v16  ;;  %2578 = vmatmul.mubr.bf16.vlgmr.msra.gmra.mrb[16].mxu1 %v5759_v16 }
 0x22a   :  { %2441 = vmatprep.mubr.bf16.mxu0 %v5789_v45  ;;  %2473 = vmatpush1.bf16.msra.mxu0 %v4901_v2  ;;  %v4973_v2 = vld [vmem:[#allocation8 + $0x380] ss:$16 sps:$4 sm:$0xff]  }
 0x22b   :  { %2587 = vmatprep.mubr.bf16.mxu1 %v5789_v45  ;;  %2619 = vmatpush1.bf16.msra.mxu1 %v4904_v48  ;;  %v4976_v48 = vld [vmem:[#allocation8 + $0x388] ss:$16 sps:$4 sm:$0xff]  }
 0x22c   :  { %2474 = vmatprep.subr.bf16.mxu0 %v4909_v47  ;;  %2620 = vmatprep.subr.bf16.mxu1 %v4912_v61  ;;  %v4981_v47 = vld [vmem:[#allocation8 + $0x3a4] ss:$16 sps:$4 sm:$0xff]   ;;  %v4984_v61 = vld [vmem:[#allocation8 + $0x3ac] ss:$16 sps:$4 sm:$0xff]  }
 0x22e   :  { %2475 = vmatpush1.bf16.msra.mxu0 %v4907_v40  ;;  %v4979_v40 = vld [vmem:[#allocation8 + $0x3a0] ss:$16 sps:$4 sm:$0xff]  }
 0x22f   :  { %2621 = vmatpush1.bf16.msra.mxu1 %v4910_v7  ;;  %2476 = vmatprep.subr.bf16.mxu0 %v4915_v63  ;;  %v4982_v7 = vld [vmem:[#allocation8 + $0x3a8] ss:$16 sps:$4 sm:$0xff]   ;;  %v4987_v63 = vld [vmem:[#allocation8 + $0x3c4] ss:$16 sps:$4 sm:$0xff]  }
 0x230   :  { %2622 = vmatprep.subr.bf16.mxu1 %v4918_v46  ;;  %v4990_v46 = vld [vmem:[#allocation8 + $0x3cc] ss:$16 sps:$4 sm:$0xff]  }
 0x231   :  { %2442 = vmatmul.mubr.bf16.gmra.mrb[20].mxu0 %v5811_v3  ;;  %2588 = vmatmul.mubr.bf16.gmra.mrb[20].mxu1 %v5811_v3 }
 0x232   :  { %2451 = vmatprep.mubr.bf16.mxu0 %v5815_v32  ;;  %2477 = vmatpush1.bf16.msra.mxu0 %v4913_v8  ;;  %v4985_v8 = vld [vmem:[#allocation8 + $0x3c0] ss:$16 sps:$4 sm:$0xff]  }
 0x233   :  { %2597 = vmatprep.mubr.bf16.mxu1 %v5815_v32  ;;  %2623 = vmatpush1.bf16.msra.mxu1 %v4916_v27  ;;  %v4988_v27 = vld [vmem:[#allocation8 + $0x3c8] ss:$16 sps:$4 sm:$0xff]  }
 0x234   :  { %2478 = vmatprep.subr.bf16.mxu0 %v4921_v62  ;;  %2624 = vmatprep.subr.bf16.mxu1 %v4924_v6  ;;  %v4993_v62 = vld [vmem:[#allocation8 + $0x3e4] ss:$16 sps:$4 sm:$0xff]   ;;  %v4996_v6 = vld [vmem:[#allocation8 + $0x3ec] ss:$16 sps:$4 sm:$0xff]  }
 0x236   :  { %2479 = vmatpush1.bf16.msra.mxu0 %v4919_v12  ;;  %v4991_v12 = vld [vmem:[#allocation8 + $0x3e0] ss:$16 sps:$4 sm:$0xff]  }
 0x237   :  { %2625 = vmatpush1.bf16.msra.mxu1 %v4922_v19  ;;  %2480 = vmatprep.subr.bf16.mxu0 %v4927_v14  ;;  %v4994_v19 = vld [vmem:[#allocation8 + $0x3e8] ss:$16 sps:$4 sm:$0xff]   ;;  %v4999_v14 = vld [vmem:[#allocation10 + $0x4] ss:$16 sps:$4 sm:$0xff]  }
 0x238   :  { %2626 = vmatprep.subr.bf16.mxu1 %v4930_v52  ;;  %v5002_v52 = vld [vmem:[#allocation10 + $0xc] ss:$16 sps:$4 sm:$0xff]  }
 0x239   :  { %2452 = vmatmul.mubr.bf16.gmra.mrb[24].mxu0 %v5819_v50  ;;  %2598 = vmatmul.mubr.bf16.gmra.mrb[24].mxu1 %v5819_v50 }
 0x23a   :  { %2461 = vmatprep.mubr.bf16.mxu0 %v5840_v1  ;;  %2481 = vmatpush1.bf16.msra.mxu0 %v4925_v18  ;;  %v4997_v18 = vld [vmem:[#allocation10] ss:$16 sps:$4 sm:$0xff]  }
 0x23b   :  { %2607 = vmatprep.mubr.bf16.mxu1 %v5840_v1  ;;  %2627 = vmatpush1.bf16.msra.mxu1 %v4928_v17  ;;  %v5000_v17 = vld [vmem:[#allocation10 + $0x8] ss:$16 sps:$4 sm:$0xff]  }
 0x23c   :  { %2482 = vmatprep.subr.bf16.mxu0 %v4933_v36  ;;  %2628 = vmatprep.subr.bf16.mxu1 %v4936_v31  ;;  %v5005_v36 = vld [vmem:[#allocation10 + $0x24] ss:$16 sps:$4 sm:$0xff]   ;;  %v5008_v31 = vld [vmem:[#allocation10 + $0x2c] ss:$16 sps:$4 sm:$0xff]  }
 0x23e   :  { %2483 = vmatpush1.bf16.msra.mxu0 %v4931_v15  ;;  %v5003_v15 = vld [vmem:[#allocation10 + $0x20] ss:$16 sps:$4 sm:$0xff]  }
 0x23f   :  { %2629 = vmatpush1.bf16.msra.mxu1 %v4934_v37  ;;  %2484 = vmatprep.subr.bf16.mxu0 %v4939_v35  ;;  %v5006_v37 = vld [vmem:[#allocation10 + $0x28] ss:$16 sps:$4 sm:$0xff]   ;;  %v5011_v35 = vld [vmem:[#allocation10 + $0x44] ss:$16 sps:$4 sm:$0xff]  }
 0x240   :  { %2630 = vmatprep.subr.bf16.mxu1 %v4942_v28  ;;  %v5014_v28 = vld [vmem:[#allocation10 + $0x4c] ss:$16 sps:$4 sm:$0xff]  }
 0x241   :  { %2462 = vmatmul.mubr.bf16.gmra.mrb[28].mxu0 %v5893_v29  ;;  %2608 = vmatmul.mubr.bf16.gmra.mrb[28].mxu1 %v5893_v29 }
 0x242   :  { %2485 = vmatpush1.bf16.msra.mxu0 %v4937_v5  ;;  %2504 = vmatprep.mubr.bf16.mxu0 %v5901_v43  ;;  %v5009_v5 = vld [vmem:[#allocation10 + $0x40] ss:$16 sps:$4 sm:$0xff]  }
 0x243   :  { %2631 = vmatpush1.bf16.msra.mxu1 %v4940_v55  ;;  %2650 = vmatprep.mubr.bf16.mxu1 %v5901_v43  ;;  %v5012_v55 = vld [vmem:[#allocation10 + $0x48] ss:$16 sps:$4 sm:$0xff]  }
 0x244   :  { %2486 = vmatprep.subr.bf16.mxu0 %v4945_v57  ;;  %2632 = vmatprep.subr.bf16.mxu1 %v4948_v54  ;;  %v5017_v57 = vld [vmem:[#allocation10 + $0x64] ss:$16 sps:$4 sm:$0xff]   ;;  %v5020_v54 = vld [vmem:[#allocation10 + $0x6c] ss:$16 sps:$4 sm:$0xff]  }
 0x246   :  { %2487 = vmatpush1.bf16.msra.mxu0 %v4943_v60  ;;  %v5015_v60 = vld [vmem:[#allocation10 + $0x60] ss:$16 sps:$4 sm:$0xff]  }
 0x247   :  { %2633 = vmatpush1.bf16.msra.mxu1 %v4946_v30  ;;  %2488 = vmatprep.subr.bf16.mxu0 %v4951_v41  ;;  %v5018_v30 = vld [vmem:[#allocation10 + $0x68] ss:$16 sps:$4 sm:$0xff]   ;;  %v5023_v41 = vld [vmem:[#allocation10 + $0x84] ss:$16 sps:$4 sm:$0xff]  }
 0x248   :  { %2634 = vmatprep.subr.bf16.mxu1 %v4954_v34  ;;  %v5026_v34 = vld [vmem:[#allocation10 + $0x8c] ss:$16 sps:$4 sm:$0xff]  }
 0x24a   :  { %2489 = vmatpush1.bf16.msra.mxu0 %v4949_v39  ;;  %v5021_v39 = vld [vmem:[#allocation10 + $0x80] ss:$16 sps:$4 sm:$0xff]  }
 0x24b   :  { %2635 = vmatpush1.bf16.msra.mxu1 %v4952_v22  ;;  %2490 = vmatprep.subr.bf16.mxu0 %v4957_v58  ;;  %v5024_v22 = vld [vmem:[#allocation10 + $0x88] ss:$16 sps:$4 sm:$0xff]   ;;  %v5029_v58 = vld [vmem:[#allocation10 + $0xa4] ss:$16 sps:$4 sm:$0xff]  }
 0x24c   :  { %2636 = vmatprep.subr.bf16.mxu1 %v4960_v23  ;;  %v5032_v23 = vld [vmem:[#allocation10 + $0xac] ss:$16 sps:$4 sm:$0xff]  }
 0x24e   :  { %2491 = vmatpush1.bf16.msra.mxu0 %v4955_v51  ;;  %v5027_v51 = vld [vmem:[#allocation10 + $0xa0] ss:$16 sps:$4 sm:$0xff]  }
 0x24f   :  { %2637 = vmatpush1.bf16.msra.mxu1 %v4958_v11  ;;  %2492 = vmatprep.subr.bf16.mxu0 %v4963_v21  ;;  %v5030_v11 = vld [vmem:[#allocation10 + $0xa8] ss:$16 sps:$4 sm:$0xff]   ;;  %v5035_v21 = vld [vmem:[#allocation10 + $0xc4] ss:$16 sps:$4 sm:$0xff]  }
 0x250   :  { %2638 = vmatprep.subr.bf16.mxu1 %v4966_v33  ;;  %v5038_v33 = vld [vmem:[#allocation10 + $0xcc] ss:$16 sps:$4 sm:$0xff]  }
 0x252   :  { %2493 = vmatpush1.bf16.msra.mxu0 %v4961_v20  ;;  %v5033_v20 = vld [vmem:[#allocation10 + $0xc0] ss:$16 sps:$4 sm:$0xff]  }
 0x253   :  { %2639 = vmatpush1.bf16.msra.mxu1 %v4964_v4  ;;  %2494 = vmatprep.subr.bf16.mxu0 %v4969_v25  ;;  %v5036_v4 = vld [vmem:[#allocation10 + $0xc8] ss:$16 sps:$4 sm:$0xff]   ;;  %v5041_v25 = vld [vmem:[#allocation10 + $0xe4] ss:$16 sps:$4 sm:$0xff]  }
 0x254   :  { %2640 = vmatprep.subr.bf16.mxu1 %v4972_v53  ;;  %v5044_v53 = vld [vmem:[#allocation10 + $0xec] ss:$16 sps:$4 sm:$0xff]  }
 0x256   :  { %2495 = vmatpush1.bf16.msra.mxu0 %v4967_v10  ;;  %v5039_v10 = vld [vmem:[#allocation10 + $0xe0] ss:$16 sps:$4 sm:$0xff]  }
 0x257   :  { %2641 = vmatpush1.bf16.msra.mxu1 %v4970_v24  ;;  %2496 = vmatprep.subr.bf16.mxu0 %v4975_v44  ;;  %v5042_v24 = vld [vmem:[#allocation10 + $0xe8] ss:$16 sps:$4 sm:$0xff]   ;;  %v5047_v44 = vld [vmem:[#allocation10 + $0x104] ss:$16 sps:$4 sm:$0xff]  }
 0x258   :  { %2642 = vmatprep.subr.bf16.mxu1 %v4978_v59  ;;  %v5050_v59 = vld [vmem:[#allocation10 + $0x10c] ss:$16 sps:$4 sm:$0xff]  }
 0x25a   :  { %2497 = vmatpush1.bf16.msra.mxu0 %v4973_v2  ;;  %v5045_v2 = vld [vmem:[#allocation10 + $0x100] ss:$16 sps:$4 sm:$0xff]  }
 0x25b   :  { %2643 = vmatpush1.bf16.msra.mxu1 %v4976_v48  ;;  %2498 = vmatprep.subr.bf16.mxu0 %v4981_v47  ;;  %v5048_v48 = vld [vmem:[#allocation10 + $0x108] ss:$16 sps:$4 sm:$0xff]   ;;  %v5053_v47 = vld [vmem:[#allocation10 + $0x124] ss:$16 sps:$4 sm:$0xff]  }
 0x25c   :  { %2644 = vmatprep.subr.bf16.mxu1 %v4984_v61  ;;  %v5056_v61 = vld [vmem:[#allocation10 + $0x12c] ss:$16 sps:$4 sm:$0xff]  }
 0x25e   :  { %2499 = vmatpush1.bf16.msra.mxu0 %v4979_v40  ;;  %v5051_v40 = vld [vmem:[#allocation10 + $0x120] ss:$16 sps:$4 sm:$0xff]  }
 0x25f   :  { %2645 = vmatpush1.bf16.msra.mxu1 %v4982_v7  ;;  %2500 = vmatprep.subr.bf16.mxu0 %v4987_v63  ;;  %v5059_v7 = vld [vmem:[#allocation10 + $0x144] ss:$16 sps:$4 sm:$0xff]   ;;  %v5062_v63 = vld [vmem:[#allocation10 + $0x14c] ss:$16 sps:$4 sm:$0xff]  }
 0x260   :  { %2646 = vmatprep.subr.bf16.mxu1 %v4990_v46  ;;  %v5057_v46 = vld [vmem:[#allocation10 + $0x140] ss:$16 sps:$4 sm:$0xff]  }
 0x262   :  { %2501 = vmatpush1.bf16.msra.mxu0 %v4985_v8  ;;  %v5060_v8 = vld [vmem:[#allocation10 + $0x148] ss:$16 sps:$4 sm:$0xff]  }
 0x263   :  { %2647 = vmatpush1.bf16.msra.mxu1 %v4988_v27  ;;  %2502 = vmatprep.subr.bf16.mxu0 %v4993_v62  ;;  %v5065_v27 = vld [vmem:[#allocation10 + $0x164] ss:$16 sps:$4 sm:$0xff]   ;;  %v5068_v62 = vld [vmem:[#allocation10 + $0x16c] ss:$16 sps:$4 sm:$0xff]  }
 0x264   :  { %2648 = vmatprep.subr.bf16.mxu1 %v4996_v6  ;;  %v5063_v6 = vld [vmem:[#allocation10 + $0x160] ss:$16 sps:$4 sm:$0xff]  }
 0x266   :  { %2503 = vmatpush1.bf16.msra.mxu0 %v4991_v12  ;;  %v5066_v12 = vld [vmem:[#allocation10 + $0x168] ss:$16 sps:$4 sm:$0xff]  }
 0x267   :  { %2649 = vmatpush1.bf16.msra.mxu1 %v4994_v19  ;;  %3571 = vmatprep.subr.bf16.mxu0 %v4999_v14  ;;  %v5071_v19 = vld [vmem:[#allocation10 + $0x184] ss:$16 sps:$4 sm:$0xff]   ;;  %v5074_v14 = vld [vmem:[#allocation10 + $0x18c] ss:$16 sps:$4 sm:$0xff]  }
 0x268   :  { %3717 = vmatprep.subr.bf16.mxu1 %v5002_v52  ;;  %v5069_v52 = vld [vmem:[#allocation10 + $0x180] ss:$16 sps:$4 sm:$0xff]  }
 0x269   :  { %2505 = vmatmul.mubr.bf16.vlgmr.msra.gmra.mrb[16].mxu0 %v5772_v49 }
 0x26a   :  { %2651 = vmatmul.mubr.bf16.vlgmr.msra.gmra.mrb[16].mxu1 %v5772_v49  ;;  %2514 = vmatprep.mubr.bf16.mxu0 %v5832_v56 }
 0x26b   :  { %2660 = vmatprep.mubr.bf16.mxu1 %v5832_v56  ;;  %3572 = vmatpush1.bf16.msra.mxu0 %v4997_v18  ;;  %v5072_v18 = vld [vmem:[#allocation10 + $0x188] ss:$16 sps:$4 sm:$0xff]  }
 0x26c   :  { %3718 = vmatpush1.bf16.msra.mxu1 %v5000_v17  ;;  %3573 = vmatprep.subr.bf16.mxu0 %v5005_v36  ;;  %v5077_v17 = vld [vmem:[#allocation10 + $0x1a4] ss:$16 sps:$4 sm:$0xff]   ;;  %v5080_v36 = vld [vmem:[#allocation10 + $0x1ac] ss:$16 sps:$4 sm:$0xff]  }
 0x26d   :  { %3719 = vmatprep.subr.bf16.mxu1 %v5008_v31  ;;  %v5075_v31 = vld [vmem:[#allocation10 + $0x1a0] ss:$16 sps:$4 sm:$0xff]  }
 0x26f   :  { %3574 = vmatpush1.bf16.msra.mxu0 %v5003_v15  ;;  %v5078_v15 = vld [vmem:[#allocation10 + $0x1a8] ss:$16 sps:$4 sm:$0xff]  }
 0x270   :  { %3720 = vmatpush1.bf16.msra.mxu1 %v5006_v37  ;;  %3575 = vmatprep.subr.bf16.mxu0 %v5011_v35  ;;  %v5083_v37 = vld [vmem:[#allocation10 + $0x1c4] ss:$16 sps:$4 sm:$0xff]   ;;  %v5086_v35 = vld [vmem:[#allocation10 + $0x1cc] ss:$16 sps:$4 sm:$0xff]  }
 0x271   :  { %2515 = vmatmul.mubr.bf16.gmra.mrb[20].mxu0 %v5862_v9  ;;  %3721 = vmatprep.subr.bf16.mxu1 %v5014_v28  ;;  %v5081_v28 = vld [vmem:[#allocation10 + $0x1c0] ss:$16 sps:$4 sm:$0xff]  }
 0x272   :  { %2661 = vmatmul.mubr.bf16.gmra.mrb[20].mxu1 %v5862_v9  ;;  %2524 = vmatprep.mubr.bf16.mxu0 %v5873_v0 }
 0x273   :  { %2670 = vmatprep.mubr.bf16.mxu1 %v5873_v0  ;;  %3576 = vmatpush1.bf16.msra.mxu0 %v5009_v5  ;;  %v5084_v5 = vld [vmem:[#allocation10 + $0x1c8] ss:$16 sps:$4 sm:$0xff]  }
 0x274   :  { %3722 = vmatpush1.bf16.msra.mxu1 %v5012_v55  ;;  %3577 = vmatprep.subr.bf16.mxu0 %v5017_v57  ;;  %v5089_v55 = vld [vmem:[#allocation10 + $0x1e4] ss:$16 sps:$4 sm:$0xff]   ;;  %v5092_v57 = vld [vmem:[#allocation10 + $0x1ec] ss:$16 sps:$4 sm:$0xff]  }
 0x275   :  { %3723 = vmatprep.subr.bf16.mxu1 %v5020_v54  ;;  %v5087_v54 = vld [vmem:[#allocation10 + $0x1e0] ss:$16 sps:$4 sm:$0xff]  }
 0x277   :  { %3578 = vmatpush1.bf16.msra.mxu0 %v5015_v60  ;;  %v5090_v60 = vld [vmem:[#allocation10 + $0x1e8] ss:$16 sps:$4 sm:$0xff]  }
 0x278   :  { %3724 = vmatpush1.bf16.msra.mxu1 %v5018_v30  ;;  %3579 = vmatprep.subr.bf16.mxu0 %v5023_v41  ;;  %v5095_v30 = vld [vmem:[#allocation10 + $0x204] ss:$16 sps:$4 sm:$0xff]   ;;  %v5098_v41 = vld [vmem:[#allocation10 + $0x20c] ss:$16 sps:$4 sm:$0xff]  }
 0x279   :  { %2525 = vmatmul.mubr.bf16.gmra.mrb[24].mxu0 %v5880_v38  ;;  %3725 = vmatprep.subr.bf16.mxu1 %v5026_v34  ;;  %v5093_v34 = vld [vmem:[#allocation10 + $0x200] ss:$16 sps:$4 sm:$0xff]  }
 0x27a   :  { %2671 = vmatmul.mubr.bf16.gmra.mrb[24].mxu1 %v5880_v38  ;;  %2534 = vmatprep.mubr.bf16.mxu0 %v5889_v13 }
 0x27b   :  { %2680 = vmatprep.mubr.bf16.mxu1 %v5889_v13  ;;  %3580 = vmatpush1.bf16.msra.mxu0 %v5021_v39  ;;  %v5096_v39 = vld [vmem:[#allocation10 + $0x208] ss:$16 sps:$4 sm:$0xff]  }
 0x27c   :  { %3726 = vmatpush1.bf16.msra.mxu1 %v5024_v22  ;;  %3581 = vmatprep.subr.bf16.mxu0 %v5029_v58  ;;  %v5101_v22 = vld [vmem:[#allocation10 + $0x224] ss:$16 sps:$4 sm:$0xff]   ;;  %v5104_v58 = vld [vmem:[#allocation10 + $0x22c] ss:$16 sps:$4 sm:$0xff]  }
 0x27d   :  { %3727 = vmatprep.subr.bf16.mxu1 %v5032_v23  ;;  %v5099_v23 = vld [vmem:[#allocation10 + $0x220] ss:$16 sps:$4 sm:$0xff]  }
 0x27f   :  { %3582 = vmatpush1.bf16.msra.mxu0 %v5027_v51  ;;  %v5102_v51 = vld [vmem:[#allocation10 + $0x228] ss:$16 sps:$4 sm:$0xff]  }
 0x280   :  { %3728 = vmatpush1.bf16.msra.mxu1 %v5030_v11  ;;  %3583 = vmatprep.subr.bf16.mxu0 %v5035_v21  ;;  %v5107_v11 = vld [vmem:[#allocation10 + $0x244] ss:$16 sps:$4 sm:$0xff]   ;;  %v5110_v21 = vld [vmem:[#allocation10 + $0x24c] ss:$16 sps:$4 sm:$0xff]  }
 0x281   :  { %2535 = vmatmul.mubr.bf16.gmra.mrb[28].mxu0 %v5897_v42  ;;  %3729 = vmatprep.subr.bf16.mxu1 %v5038_v33  ;;  %v5105_v33 = vld [vmem:[#allocation10 + $0x240] ss:$16 sps:$4 sm:$0xff]  }
 0x282   :  { %2681 = vmatmul.mubr.bf16.gmra.mrb[28].mxu1 %v5897_v42  ;;  %3603 = vmatprep.mubr.bf16.mxu0 %v5757_v26 }
 0x283   :  { %3584 = vmatpush1.bf16.msra.mxu0 %v5033_v20  ;;  %3749 = vmatprep.mubr.bf16.mxu1 %v5757_v26  ;;  %v5054_v26 = vld [vmem:[#allocation10 + $0x128] ss:$16 sps:$4 sm:$0xff]  }
 0x284   :  { %3730 = vmatpush1.bf16.msra.mxu1 %v5036_v4  ;;  %3585 = vmatprep.subr.bf16.mxu0 %v5041_v25  ;;  %v5108_v20 = vld [vmem:[#allocation10 + $0x248] ss:$16 sps:$4 sm:$0xff]   ;;  %v5113_v4 = vld [vmem:[#allocation10 + $0x264] ss:$16 sps:$4 sm:$0xff]  }
 0x285   :  { %3731 = vmatprep.subr.bf16.mxu1 %v5044_v53  ;;  %v5114_v25 = vld [vmem:[#allocation10 + $0x268] ss:$16 sps:$4 sm:$0xff]   ;;  %v5119_v53 = vld [vmem:[#allocation10 + $0x284] ss:$16 sps:$4 sm:$0xff]  }
 0x287   :  { %3586 = vmatpush1.bf16.msra.mxu0 %v5039_v10  ;;  %v5122_v10 = vld [vmem:[#allocation10 + $0x28c] ss:$16 sps:$4 sm:$0xff]  }
 0x288   :  { %3732 = vmatpush1.bf16.msra.mxu1 %v5042_v24  ;;  %3587 = vmatprep.subr.bf16.mxu0 %v5047_v44  ;;  %v5117_v24 = vld [vmem:[#allocation10 + $0x280] ss:$16 sps:$4 sm:$0xff]   ;;  %v5120_v44 = vld [vmem:[#allocation10 + $0x288] ss:$16 sps:$4 sm:$0xff]  }
 0x289   :  { %3733 = vmatprep.subr.bf16.mxu1 %v5050_v59  ;;  %v5125_v59 = vld [vmem:[#allocation10 + $0x2a4] ss:$16 sps:$4 sm:$0xff]  }
 0x28b   :  { %3588 = vmatpush1.bf16.msra.mxu0 %v5045_v2 }
 0x28c   :  { %3734 = vmatpush1.bf16.msra.mxu1 %v5048_v48  ;;  %3589 = vmatprep.subr.bf16.mxu0 %v5053_v47 }
 0x28d   :  { %3735 = vmatprep.subr.bf16.mxu1 %v5056_v61  ;;  %v5123_v61 = vld [vmem:[#allocation10 + $0x2a0] ss:$16 sps:$4 sm:$0xff]  }
 0x28f   :  { %3590 = vmatpush1.bf16.msra.mxu0 %v5051_v40 }
 0x290   :  { %3736 = vmatpush1.bf16.msra.mxu1 %v5054_v26  ;;  %3591 = vmatprep.subr.bf16.mxu0 %v5059_v7  ;;  %v5126_v7 = vld [vmem:[#allocation10 + $0x2a8] ss:$16 sps:$4 sm:$0xff]  }
 0x291   :  { %3737 = vmatprep.subr.bf16.mxu1 %v5062_v63 }
 0x293   :  { %3592 = vmatpush1.bf16.msra.mxu0 %v5057_v46 }
 0x294   :  { %3738 = vmatpush1.bf16.msra.mxu1 %v5060_v8  ;;  %3593 = vmatprep.subr.bf16.mxu0 %v5065_v27  ;;  %v5131_v8 = vld [vmem:[#allocation10 + $0x2c4] ss:$16 sps:$4 sm:$0xff]  }
 0x295   :  { %3739 = vmatprep.subr.bf16.mxu1 %v5068_v62  ;;  %v5134_v62 = vld [vmem:[#allocation10 + $0x2cc] ss:$16 sps:$4 sm:$0xff]  }
 0x297   :  { %3594 = vmatpush1.bf16.msra.mxu0 %v5063_v6 }
 0x298   :  { %3740 = vmatpush1.bf16.msra.mxu1 %v5066_v12  ;;  %3595 = vmatprep.subr.bf16.mxu0 %v5071_v19  ;;  %v5132_v19 = vld [vmem:[#allocation10 + $0x2c8] ss:$16 sps:$4 sm:$0xff]  }
 0x299   :  { %3741 = vmatprep.subr.bf16.mxu1 %v5074_v14  ;;  %v5137_v14 = vld [vmem:[#allocation10 + $0x2e4] ss:$16 sps:$4 sm:$0xff]  }
 0x29b   :  { %3596 = vmatpush1.bf16.msra.mxu0 %v5069_v52  ;;  %v5140_v52 = vld [vmem:[#allocation10 + $0x2ec] ss:$16 sps:$4 sm:$0xff]  }
 0x29c   :  { %3742 = vmatpush1.bf16.msra.mxu1 %v5072_v18  ;;  %3597 = vmatprep.subr.bf16.mxu0 %v5077_v17 }
 0x29d   :  { %3743 = vmatprep.subr.bf16.mxu1 %v5080_v36 }
 0x29f   :  { %3598 = vmatpush1.bf16.msra.mxu0 %v5075_v31 }
 0x2a0   :  { %3744 = vmatpush1.bf16.msra.mxu1 %v5078_v15  ;;  %3599 = vmatprep.subr.bf16.mxu0 %v5083_v37  ;;  %v5135_v15 = vld [vmem:[#allocation10 + $0x2e0] ss:$16 sps:$4 sm:$0xff]  }
 0x2a1   :  { %3745 = vmatprep.subr.bf16.mxu1 %v5086_v35 }
 0x2a3   :  { %3600 = vmatpush1.bf16.msra.mxu0 %v5081_v28  ;;  %v5138_v28 = vld [vmem:[#allocation10 + $0x2e8] ss:$16 sps:$4 sm:$0xff]  }
 0x2a4   :  { %3746 = vmatpush1.bf16.msra.mxu1 %v5084_v5  ;;  %3601 = vmatprep.subr.bf16.mxu0 %v5089_v55 }
 0x2a5   :  { %3747 = vmatprep.subr.bf16.mxu1 %v5092_v57  ;;  %v5143_v57 = vld [vmem:[#allocation10 + $0x304] ss:$16 sps:$4 sm:$0xff]  }
 0x2a7   :  { %3602 = vmatpush1.bf16.msra.mxu0 %v5087_v54 }
 0x2a8   :  { %3748 = vmatpush1.bf16.msra.mxu1 %v5090_v60  ;;  %3644 = vmatprep.subr.bf16.mxu0 %v5095_v30  ;;  %v5146_v60 = vld [vmem:[#allocation10 + $0x30c] ss:$16 sps:$4 sm:$0xff]  }
 0x2a9   :  { %3790 = vmatprep.subr.bf16.mxu1 %v5098_v41 }
 0x2aa   :  { %3604 = vmatmul.mubr.bf16.vlgmr.msra.gmra.mrb[32].mxu0 %v5759_v16 }
 0x2ab   :  { %3750 = vmatmul.mubr.bf16.vlgmr.msra.gmra.mrb[32].mxu1 %v5759_v16  ;;  %3613 = vmatprep.mubr.bf16.mxu0 %v5789_v45  ;;  %v5116_v16 = vld [vmem:[#allocation10 + $0x26c] ss:$16 sps:$4 sm:$0xff]  }
 0x2ac   :  { %3645 = vmatpush1.bf16.msra.mxu0 %v5093_v34  ;;  %3759 = vmatprep.mubr.bf16.mxu1 %v5789_v45  ;;  %v5111_v45 = vld [vmem:[#allocation10 + $0x260] ss:$16 sps:$4 sm:$0xff]   ;;  %v5144_v34 = vld [vmem:[#allocation10 + $0x308] ss:$16 sps:$4 sm:$0xff]  }
 0x2ad   :  { %3791 = vmatpush1.bf16.msra.mxu1 %v5096_v39  ;;  %3646 = vmatprep.subr.bf16.mxu0 %v5101_v22  ;;  %v5149_v39 = vld [vmem:[#allocation10 + $0x324] ss:$16 sps:$4 sm:$0xff]   ;;  %v5152_v22 = vld [vmem:[#allocation10 + $0x32c] ss:$16 sps:$4 sm:$0xff]  }
 0x2ae   :  { %3792 = vmatprep.subr.bf16.mxu1 %v5104_v58 }
 0x2b0   :  { %3647 = vmatpush1.bf16.msra.mxu0 %v5099_v23 }
 0x2b1   :  { %3793 = vmatpush1.bf16.msra.mxu1 %v5102_v51  ;;  %3648 = vmatprep.subr.bf16.mxu0 %v5107_v11 }
 0x2b2   :  { %3614 = vmatmul.mubr.bf16.gmra.mrb[36].mxu0 %v5811_v3  ;;  %3794 = vmatprep.subr.bf16.mxu1 %v5110_v21  ;;  %v5147_v21 = vld [vmem:[#allocation10 + $0x320] ss:$16 sps:$4 sm:$0xff]  }
 0x2b3   :  { %3760 = vmatmul.mubr.bf16.gmra.mrb[36].mxu1 %v5811_v3  ;;  %3623 = vmatprep.mubr.bf16.mxu0 %v5815_v32  ;;  %v5128_v3 = vld [vmem:[#allocation10 + $0x2ac] ss:$16 sps:$4 sm:$0xff]  }
 0x2b4   :  { %3649 = vmatpush1.bf16.msra.mxu0 %v5105_v33  ;;  %3769 = vmatprep.mubr.bf16.mxu1 %v5815_v32 }
 0x2b5   :  { %3795 = vmatpush1.bf16.msra.mxu1 %v5108_v20  ;;  %3650 = vmatprep.subr.bf16.mxu0 %v5113_v4  ;;  %v5150_v4 = vld [vmem:[#allocation10 + $0x328] ss:$16 sps:$4 sm:$0xff]  }
 0x2b6   :  { %3796 = vmatprep.subr.bf16.mxu1 %v5116_v16 }
 0x2b8   :  { %3651 = vmatpush1.bf16.msra.mxu0 %v5111_v45 }
 0x2b9   :  { %3797 = vmatpush1.bf16.msra.mxu1 %v5114_v25  ;;  %3652 = vmatprep.subr.bf16.mxu0 %v5119_v53  ;;  %v5155_v25 = vld [vmem:[#allocation10 + $0x344] ss:$16 sps:$4 sm:$0xff]  }
 0x2ba   :  { %3624 = vmatmul.mubr.bf16.gmra.mrb[40].mxu0 %v5819_v50  ;;  %3798 = vmatprep.subr.bf16.mxu1 %v5122_v10 }
 0x2bb   :  { %3770 = vmatmul.mubr.bf16.gmra.mrb[40].mxu1 %v5819_v50  ;;  %3633 = vmatprep.mubr.bf16.mxu0 %v5840_v1  ;;  %v1334_v32 = vpop.f32.mrb[0].mxu0  ;;  %v1480_v2 = vpop.f32.mrb[0].mxu1 }
 0x2bc   :  { %3653 = vmatpush1.bf16.msra.mxu0 %v5117_v24  ;;  %3779 = vmatprep.mubr.bf16.mxu1 %v5840_v1  ;;  %v1336_v48 = vpop.f32.mrb[1].mxu0  ;;  %v1482_v47 = vpop.f32.mrb[1].mxu1  ;;  %v5129_v1 = vld [vmem:[#allocation10 + $0x2c0] ss:$16 sps:$4 sm:$0xff]   ;;  %v5158_v24 = vld [vmem:[#allocation10 + $0x34c] ss:$16 sps:$4 sm:$0xff]  }
 0x2bd   :  { %3799 = vmatpush1.bf16.msra.mxu1 %v5120_v44  ;;  %v4457_v40 = vpack.c.bf16 %v1336_v48, %v1334_v32  ;;  %v4458_v26 = vpack.c.bf16 %v1482_v47, %v1480_v2  ;;  %3654 = vmatprep.subr.bf16.mxu0 %v5125_v59  ;;  %v1338_v63 = vpop.f32.mrb[2].mxu0  ;;  %v1484_v46 = vpop.f32.mrb[2].mxu1  ;;  %v5156_v32 = vld [vmem:[#allocation10 + $0x348] ss:$16 sps:$4 sm:$0xff]   ;;  %v5161_v2 = vld [vmem:[#allocation10 + $0x364] ss:$16 sps:$4 sm:$0xff]  }
 0x2be   :  { %3800 = vmatprep.subr.bf16.mxu1 %v5128_v3  ;;  %v1340_v50 = vpop.f32.mrb[3].mxu0  ;;  %v1486_v27 = vpop.f32.mrb[3].mxu1  ;;  %v5153_v3 = vld [vmem:[#allocation10 + $0x340] ss:$16 sps:$4 sm:$0xff]   ;;  %v5164_v48 = vld [vmem:[#allocation10 + $0x36c] ss:$16 sps:$4 sm:$0xff]  }
 0x2bf   :  { %1615 = vst [vmem:[#allocation11] sm:$0xff] %v4457_v40  ;;  %1616 = vst [vmem:[#allocation11 + $0x8] sm:$0xff] %v4458_v26  ;;  %v4459_v6 = vpack.c.bf16 %v1340_v50, %v1338_v63  ;;  %v4460_v12 = vpack.c.bf16 %v1486_v27, %v1484_v46 }
 0x2c0   :  { %3655 = vmatpush1.bf16.msra.mxu0 %v5123_v61 }
 0x2c1   :  { %3801 = vmatpush1.bf16.msra.mxu1 %v5126_v7  ;;  %1617 = vst [vmem:[#allocation11 + $0x10] sm:$0xff] %v4459_v6  ;;  %1618 = vst [vmem:[#allocation11 + $0x18] sm:$0xff] %v4460_v12  ;;  %3656 = vmatprep.subr.bf16.mxu0 %v5131_v8  ;;  %v5159_v7 = vld [vmem:[#allocation10 + $0x360] ss:$16 sps:$4 sm:$0xff]   ;;  %v5162_v8 = vld [vmem:[#allocation10 + $0x368] ss:$16 sps:$4 sm:$0xff]  }
 0x2c2   :  { %3634 = vmatmul.mubr.bf16.gmra.mrb[44].mxu0 %v5893_v29  ;;  %3802 = vmatprep.subr.bf16.mxu1 %v5134_v62  ;;  %v5167_v62 = vld [vmem:[#allocation10 + $0x384] ss:$16 sps:$4 sm:$0xff]  }
 0x2c3   :  { %3780 = vmatmul.mubr.bf16.gmra.mrb[44].mxu1 %v5893_v29  ;;  %3676 = vmatprep.mubr.bf16.mxu0 %v5901_v43  ;;  %v1344_v18 = vpop.f32.mrb[4].mxu0  ;;  %v1490_v17 = vpop.f32.mrb[4].mxu1 }
 0x2c4   :  { %3657 = vmatpush1.bf16.msra.mxu0 %v5129_v1  ;;  %3822 = vmatprep.mubr.bf16.mxu1 %v5901_v43  ;;  %v1346_v36 = vpop.f32.mrb[5].mxu0  ;;  %v1492_v31 = vpop.f32.mrb[5].mxu1  ;;  %v5141_v43 = vld [vmem:[#allocation10 + $0x300] ss:$16 sps:$4 sm:$0xff]   ;;  %v5170_v1 = vld [vmem:[#allocation10 + $0x38c] ss:$16 sps:$4 sm:$0xff]  }
 0x2c5   :  { %3803 = vmatpush1.bf16.msra.mxu1 %v5132_v19  ;;  %v4461_v37 = vpack.c.bf16 %v1346_v36, %v1344_v18  ;;  %v4462_v35 = vpack.c.bf16 %v1492_v31, %v1490_v17  ;;  %3658 = vmatprep.subr.bf16.mxu0 %v5137_v14  ;;  %v1348_v5 = vpop.f32.mrb[6].mxu0  ;;  %v1494_v55 = vpop.f32.mrb[6].mxu1  ;;  %v5168_v18 = vld [vmem:[#allocation10 + $0x388] ss:$16 sps:$4 sm:$0xff]   ;;  %v5173_v17 = vld [vmem:[#allocation10 + $0x3a4] ss:$16 sps:$4 sm:$0xff]  }
 0x2c6   :  { %3804 = vmatprep.subr.bf16.mxu1 %v5140_v52  ;;  %v1350_v29 = vpop.f32.mrb[7].mxu0  ;;  %v1496_v54 = vpop.f32.mrb[7].mxu1  ;;  %v5165_v52 = vld [vmem:[#allocation10 + $0x380] ss:$16 sps:$4 sm:$0xff]   ;;  %v5176_v36 = vld [vmem:[#allocation10 + $0x3ac] ss:$16 sps:$4 sm:$0xff]  }
 0x2c7   :  { %1619 = vst [vmem:[#allocation11 + $0x20] sm:$0xff] %v4461_v37  ;;  %1620 = vst [vmem:[#allocation11 + $0x28] sm:$0xff] %v4462_v35  ;;  %v4463_v30 = vpack.c.bf16 %v1350_v29, %v1348_v5  ;;  %v4464_v41 = vpack.c.bf16 %v1496_v54, %v1494_v55  ;;  %v5171_v31 = vld [vmem:[#allocation10 + $0x3a0] ss:$16 sps:$4 sm:$0xff]   ;;  %v5179_v37 = vld [vmem:[#allocation10 + $0x3c4] ss:$16 sps:$4 sm:$0xff]  }
 0x2c8   :  { %3659 = vmatpush1.bf16.msra.mxu0 %v5135_v15  ;;  %v5174_v15 = vld [vmem:[#allocation10 + $0x3a8] ss:$16 sps:$4 sm:$0xff]   ;;  %v5182_v35 = vld [vmem:[#allocation10 + $0x3cc] ss:$16 sps:$4 sm:$0xff]   ;;  %v5185_v55 = vld [vmem:[#allocation10 + $0x3e4] ss:$16 sps:$4 sm:$0xff]  }
 0x2c9   :  { %3805 = vmatpush1.bf16.msra.mxu1 %v5138_v28  ;;  %1621 = vst [vmem:[#allocation11 + $0x30] sm:$0xff] %v4463_v30  ;;  %1622 = vst [vmem:[#allocation11 + $0x38] sm:$0xff] %v4464_v41  ;;  %3660 = vmatprep.subr.bf16.mxu0 %v5143_v57  ;;  %v5177_v28 = vld [vmem:[#allocation10 + $0x3c0] ss:$16 sps:$4 sm:$0xff]   ;;  %v5180_v5 = vld [vmem:[#allocation10 + $0x3c8] ss:$16 sps:$4 sm:$0xff]  }
 0x2ca   :  { %3806 = vmatprep.subr.bf16.mxu1 %v5146_v60  ;;  %v5188_v57 = vld [vmem:[#allocation10 + $0x3ec] ss:$16 sps:$4 sm:$0xff]   ;;  %v5183_v29 = vld [vmem:[#allocation10 + $0x3e0] ss:$16 sps:$4 sm:$0xff]   ;;  %v5186_v54 = vld [vmem:[#allocation10 + $0x3e8] ss:$16 sps:$4 sm:$0xff]  }
 0x2cb   :  { %v1354_v58 = vpop.f32.mrb[8].mxu0  ;;  %v1500_v23 = vpop.f32.mrb[8].mxu1 }
 0x2cc   :  { %3661 = vmatpush1.bf16.msra.mxu0 %v5141_v43  ;;  %v1356_v51 = vpop.f32.mrb[9].mxu0  ;;  %v1502_v11 = vpop.f32.mrb[9].mxu1 }
 0x2cd   :  { %3807 = vmatpush1.bf16.msra.mxu1 %v5144_v34  ;;  %v4465_v33 = vpack.c.bf16 %v1356_v51, %v1354_v58  ;;  %v4466_v20 = vpack.c.bf16 %v1502_v11, %v1500_v23  ;;  %3662 = vmatprep.subr.bf16.mxu0 %v5149_v39  ;;  %v1358_v16 = vpop.f32.mrb[10].mxu0  ;;  %v1504_v45 = vpop.f32.mrb[10].mxu1 }
 0x2ce   :  { %3808 = vmatprep.subr.bf16.mxu1 %v5152_v22  ;;  %v1360_v53 = vpop.f32.mrb[11].mxu0  ;;  %v1506_v10 = vpop.f32.mrb[11].mxu1 }
 0x2cf   :  { %1623 = vst [vmem:[#allocation11 + $0x40] sm:$0xff] %v4465_v33  ;;  %1624 = vst [vmem:[#allocation11 + $0x48] sm:$0xff] %v4466_v20  ;;  %v4467_v44 = vpack.c.bf16 %v1360_v53, %v1358_v16  ;;  %v4468_v59 = vpack.c.bf16 %v1506_v10, %v1504_v45 }
 0x2d0   :  { %3663 = vmatpush1.bf16.msra.mxu0 %v5147_v21 }
 0x2d1   :  { %3809 = vmatpush1.bf16.msra.mxu1 %v5150_v4  ;;  %1625 = vst [vmem:[#allocation11 + $0x50] sm:$0xff] %v4467_v44  ;;  %1626 = vst [vmem:[#allocation11 + $0x58] sm:$0xff] %v4468_v59  ;;  %3664 = vmatprep.subr.bf16.mxu0 %v5155_v25 }
 0x2d2   :  { %3810 = vmatprep.subr.bf16.mxu1 %v5158_v24 }
 0x2d3   :  { %v1364_v47 = vpop.f32.mrb[12].mxu0  ;;  %v1510_v61 = vpop.f32.mrb[12].mxu1 }
 0x2d4   :  { %3665 = vmatpush1.bf16.msra.mxu0 %v5153_v3  ;;  %v1366_v40 = vpop.f32.mrb[13].mxu0  ;;  %v1512_v26 = vpop.f32.mrb[13].mxu1 }
 0x2d5   :  { %3811 = vmatpush1.bf16.msra.mxu1 %v5156_v32  ;;  %v4469_v63 = vpack.c.bf16 %v1366_v40, %v1364_v47  ;;  %v4470_v46 = vpack.c.bf16 %v1512_v26, %v1510_v61  ;;  %3666 = vmatprep.subr.bf16.mxu0 %v5161_v2  ;;  %v1368_v50 = vpop.f32.mrb[14].mxu0  ;;  %v1514_v27 = vpop.f32.mrb[14].mxu1 }
 0x2d6   :  { %3812 = vmatprep.subr.bf16.mxu1 %v5164_v48  ;;  %v1370_v6 = vpop.f32.mrb[15].mxu0  ;;  %v1516_v12 = vpop.f32.mrb[15].mxu1 }
 0x2d7   :  { %1627 = vst [vmem:[#allocation11 + $0x60] sm:$0xff] %v4469_v63  ;;  %1628 = vst [vmem:[#allocation11 + $0x68] sm:$0xff] %v4470_v46  ;;  %v4471_v19 = vpack.c.bf16 %v1370_v6, %v1368_v50  ;;  %v4472_v14 = vpack.c.bf16 %v1516_v12, %v1514_v27 }
 0x2d8   :  { %3667 = vmatpush1.bf16.msra.mxu0 %v5159_v7 }
 0x2d9   :  { %3813 = vmatpush1.bf16.msra.mxu1 %v5162_v8  ;;  %1629 = vst [vmem:[#allocation11 + $0x70] sm:$0xff] %v4471_v19  ;;  %1630 = vst [vmem:[#allocation11 + $0x78] sm:$0xff] %v4472_v14  ;;  %3668 = vmatprep.subr.bf16.mxu0 %v5167_v62 }
 0x2da   :  { %3814 = vmatprep.subr.bf16.mxu1 %v5170_v1 }
 0x2dc   :  { %3669 = vmatpush1.bf16.msra.mxu0 %v5165_v52 }
 0x2dd   :  { %3815 = vmatpush1.bf16.msra.mxu1 %v5168_v18  ;;  %3670 = vmatprep.subr.bf16.mxu0 %v5173_v17 }
 0x2de   :  { %3816 = vmatprep.subr.bf16.mxu1 %v5176_v36 }
 0x2e0   :  { %3671 = vmatpush1.bf16.msra.mxu0 %v5171_v31 }
 0x2e1   :  { %3817 = vmatpush1.bf16.msra.mxu1 %v5174_v15  ;;  %3672 = vmatprep.subr.bf16.mxu0 %v5179_v37 }
 0x2e2   :  { %3818 = vmatprep.subr.bf16.mxu1 %v5182_v35 }
 0x2e4   :  { %3673 = vmatpush1.bf16.msra.mxu0 %v5177_v28 }
 0x2e5   :  { %3819 = vmatpush1.bf16.msra.mxu1 %v5180_v5  ;;  %3674 = vmatprep.subr.bf16.mxu0 %v5185_v55 }
 0x2e6   :  { %3820 = vmatprep.subr.bf16.mxu1 %v5188_v57 }
 0x2e8   :  { %3675 = vmatpush1.bf16.msra.mxu0 %v5183_v29 }
 0x2e9   :  { %3821 = vmatpush1.bf16.msra.mxu1 %v5186_v54 }
 0x2eb   :  { %3677 = vmatmul.mubr.bf16.vlgmr.msra.gmra.mrb[32].mxu0 %v5772_v49 }
 0x2ec   :  { %3823 = vmatmul.mubr.bf16.vlgmr.msra.gmra.mrb[32].mxu1 %v5772_v49  ;;  %3686 = vmatprep.mubr.bf16.mxu0 %v5832_v56 }
 0x2ed   :  { %3832 = vmatprep.mubr.bf16.mxu1 %v5832_v56 }
 0x2f3   :  { %3687 = vmatmul.mubr.bf16.gmra.mrb[36].mxu0 %v5862_v9 }
 0x2f4   :  { %3833 = vmatmul.mubr.bf16.gmra.mrb[36].mxu1 %v5862_v9  ;;  %3696 = vmatprep.mubr.bf16.mxu0 %v5873_v0 }
 0x2f5   :  { %3842 = vmatprep.mubr.bf16.mxu1 %v5873_v0 }
 0x2fb   :  { %3697 = vmatmul.mubr.bf16.gmra.mrb[40].mxu0 %v5880_v38 }
 0x2fc   :  { %3843 = vmatmul.mubr.bf16.gmra.mrb[40].mxu1 %v5880_v38  ;;  %3706 = vmatprep.mubr.bf16.mxu0 %v5889_v13 }
 0x2fd   :  { %3852 = vmatprep.mubr.bf16.mxu1 %v5889_v13 }
 0x303   :  { %3707 = vmatmul.mubr.bf16.gmra.mrb[44].mxu0 %v5897_v42 }
 0x304   :  { %3853 = vmatmul.mubr.bf16.gmra.mrb[44].mxu1 %v5897_v42 }
 0x33c   :  { %v2506_v49 = vpop.f32.mrb[16].mxu0 }
 0x33d   :  { %v2652_v56 = vpop.f32.mrb[16].mxu1  ;;  %v2508_v60 = vpop.f32.mrb[17].mxu0 }
 0x33e   :  { %v4473_v9 = vpack.c.bf16 %v2508_v60, %v2506_v49  ;;  %v2654_v30 = vpop.f32.mrb[17].mxu1  ;;  %v2510_v41 = vpop.f32.mrb[18].mxu0 }
 0x33f   :  { %v4474_v43 = vpack.c.bf16 %v2654_v30, %v2652_v56  ;;  %v2656_v0 = vpop.f32.mrb[18].mxu1  ;;  %v2512_v34 = vpop.f32.mrb[19].mxu0 }
 0x340   :  { %2787 = vst [vmem:[#allocation12] sm:$0xff] %v4473_v9  ;;  %v4475_v39 = vpack.c.bf16 %v2512_v34, %v2510_v41  ;;  %v2658_v38 = vpop.f32.mrb[19].mxu1 }
 0x341   :  { %2788 = vst [vmem:[#allocation12 + $0x8] sm:$0xff] %v4474_v43  ;;  %v4476_v22 = vpack.c.bf16 %v2658_v38, %v2656_v0 }
 0x342   :  { %2789 = vst [vmem:[#allocation12 + $0x10] sm:$0xff] %v4475_v39 }
 0x343   :  { %2790 = vst [vmem:[#allocation12 + $0x18] sm:$0xff] %v4476_v22 }
 0x344   :  { %v2516_v13 = vpop.f32.mrb[20].mxu0 }
 0x345   :  { %v2662_v58 = vpop.f32.mrb[20].mxu1  ;;  %v2518_v23 = vpop.f32.mrb[21].mxu0 }
 0x346   :  { %v4477_v42 = vpack.c.bf16 %v2518_v23, %v2516_v13  ;;  %v2664_v51 = vpop.f32.mrb[21].mxu1  ;;  %v2520_v11 = vpop.f32.mrb[22].mxu0 }
 0x347   :  { %v4478_v21 = vpack.c.bf16 %v2664_v51, %v2662_v58  ;;  %v2666_v33 = vpop.f32.mrb[22].mxu1  ;;  %v2522_v20 = vpop.f32.mrb[23].mxu0 }
 0x348   :  { %2791 = vst [vmem:[#allocation12 + $0x20] sm:$0xff] %v4477_v42  ;;  %v4479_v4 = vpack.c.bf16 %v2522_v20, %v2520_v11  ;;  %v2668_v16 = vpop.f32.mrb[23].mxu1 }
 0x349   :  { %2792 = vst [vmem:[#allocation12 + $0x28] sm:$0xff] %v4478_v21  ;;  %v4480_v45 = vpack.c.bf16 %v2668_v16, %v2666_v33 }
 0x34a   :  { %2793 = vst [vmem:[#allocation12 + $0x30] sm:$0xff] %v4479_v4 }
 0x34b   :  { %2794 = vst [vmem:[#allocation12 + $0x38] sm:$0xff] %v4480_v45 }
 0x34c   :  { %v2526_v25 = vpop.f32.mrb[24].mxu0 }
 0x34d   :  { %v2672_v53 = vpop.f32.mrb[24].mxu1  ;;  %v2528_v10 = vpop.f32.mrb[25].mxu0 }
 0x34e   :  { %v4481_v24 = vpack.c.bf16 %v2528_v10, %v2526_v25  ;;  %v2674_v44 = vpop.f32.mrb[25].mxu1  ;;  %v2530_v59 = vpop.f32.mrb[26].mxu0 }
 0x34f   :  { %v4482_v3 = vpack.c.bf16 %v2674_v44, %v2672_v53  ;;  %v2676_v32 = vpop.f32.mrb[26].mxu1  ;;  %v2532_v2 = vpop.f32.mrb[27].mxu0 }
 0x350   :  { %2795 = vst [vmem:[#allocation12 + $0x40] sm:$0xff] %v4481_v24  ;;  %v4483_v48 = vpack.c.bf16 %v2532_v2, %v2530_v59  ;;  %v2678_v47 = vpop.f32.mrb[27].mxu1 }
 0x351   :  { %2796 = vst [vmem:[#allocation12 + $0x48] sm:$0xff] %v4482_v3  ;;  %v4484_v61 = vpack.c.bf16 %v2678_v47, %v2676_v32 }
 0x352   :  { %2797 = vst [vmem:[#allocation12 + $0x50] sm:$0xff] %v4483_v48 }
 0x353   :  { %2798 = vst [vmem:[#allocation12 + $0x58] sm:$0xff] %v4484_v61 }
 0x354   :  { %v2536_v40 = vpop.f32.mrb[28].mxu0 }
 0x355   :  { %v2682_v26 = vpop.f32.mrb[28].mxu1  ;;  %v2538_v7 = vpop.f32.mrb[29].mxu0 }
 0x356   :  { %v4485_v63 = vpack.c.bf16 %v2538_v7, %v2536_v40  ;;  %v2684_v46 = vpop.f32.mrb[29].mxu1  ;;  %v2540_v8 = vpop.f32.mrb[30].mxu0 }
 0x357   :  { %v4486_v50 = vpack.c.bf16 %v2684_v46, %v2682_v26  ;;  %v2686_v27 = vpop.f32.mrb[30].mxu1  ;;  %v2542_v62 = vpop.f32.mrb[31].mxu0 }
 0x358   :  { %2799 = vst [vmem:[#allocation12 + $0x60] sm:$0xff] %v4485_v63  ;;  %v4487_v6 = vpack.c.bf16 %v2542_v62, %v2540_v8  ;;  %v2688_v12 = vpop.f32.mrb[31].mxu1 }
 0x359   :  { %2800 = vst [vmem:[#allocation12 + $0x68] sm:$0xff] %v4486_v50  ;;  %v4488_v1 = vpack.c.bf16 %v2688_v12, %v2686_v27 }
 0x35a   :  { %2801 = vst [vmem:[#allocation12 + $0x70] sm:$0xff] %v4487_v6 }
 0x35b   :  { %2802 = vst [vmem:[#allocation12 + $0x78] sm:$0xff] %v4488_v1 }
 0x35c   :  { %5358 = shalt.err (!%p5355_p2)
}
 0x35d   :  { %s5359_s30 = scalar_lea.hbm %s6042_s7, 2048 }
 0x35e   :  { %p5360_p3 = scmp.ne.s32.totalorder %s6042_s7, %s5359_s30  ;;  %p5363_p4 = scmp.lt.u32.totalorder %s5359_s30, %s6042_s7 }
 0x360   :  { %p5365_p5 = pnand %p5363_p4, %p5360_p3 }
 0x362   :  { %5368 = shalt.err (!%p5365_p5)
}
 0x363   :  { %3998 = dma.vmem_to_hbm [thread:$0]  %s3993_s23, 2048, %s6042_s7, [#allocation13], %s5426_s28, %s5426_s28, %s5427_s29  }
 0x364   :  { %s5369_s13 = scalar_lea.vmem %s5983_s25, 2048  ;;  %p5374_p7 = scmp.lt.s32.totalorder %s5983_s25, %s5983_s25 }
 0x365   :  { %p5370_p6 = scmp.ne.s32.totalorder %s5983_s25, %s5369_s13  ;;  %p5375_p8 = scmp.lt.s32.totalorder %s5369_s13, %s5369_s13 }
 0x367   :  { %p5376_p9 = por %p5375_p8, %p5374_p7 }
 0x369   :  { %p5377_p10 = pnand %p5376_p9, %p5370_p6 }
 0x36b   :  { %5380 = shalt.err (!%p5377_p10)
}
 0x36c   :  { %s5381_s16 = scalar_lea.hbm %s6041_s6, 2048 }
 0x36d   :  { %p5382_p11 = scmp.ne.s32.totalorder %s6041_s6, %s5381_s16  ;;  %p5385_p12 = scmp.lt.u32.totalorder %s5381_s16, %s6041_s6 }
 0x36f   :  { %p5387_p13 = pnand %p5385_p12, %p5382_p11 }
 0x371   :  { %5390 = shalt.err (!%p5387_p13)
}
 0x372   :  { %3986 = dma.vmem_to_hbm [thread:$0]  %s5983_s25, 2048, %s6041_s6, [#allocation4], %s5426_s28, %s5426_s28, %s5427_s29  }
 0x373   :  { %s5434_s6 = smov [#allocation14]  }
 0x374   :  { %s4004_s21 = sshll.u32 %s5434_s6, 4  ;;  %s4005_s21 = int_to_ptr.vmem [resolvable:$true] %s4004_s21 }
 0x375   :  { %s5391_s5 = scalar_lea.vmem %s4005_s21, 2048  ;;  %p5396_p1 = scmp.lt.s32.totalorder %s4005_s21, %s4005_s21 }
 0x376   :  { %p5392_p0 = scmp.ne.s32.totalorder %s4005_s21, %s5391_s5  ;;  %p5397_p2 = scmp.lt.s32.totalorder %s5391_s5, %s5391_s5 }
 0x378   :  { %p5398_p3 = por %p5397_p2, %p5396_p1 }
 0x37a   :  { %p5399_p4 = pnand %p5398_p3, %p5392_p0 }
 0x3be   :  { %v3678_v19 = vpop.f32.mrb[32].mxu0 }
 0x3bf   :  { %v3824_v14 = vpop.f32.mrb[32].mxu1  ;;  %v3680_v52 = vpop.f32.mrb[33].mxu0 }
 0x3c0   :  { %v4489_v18 = vpack.c.bf16 %v3680_v52, %v3678_v19  ;;  %v3826_v17 = vpop.f32.mrb[33].mxu1  ;;  %v3682_v36 = vpop.f32.mrb[34].mxu0 }
 0x3c1   :  { %v4490_v31 = vpack.c.bf16 %v3826_v17, %v3824_v14  ;;  %v3828_v15 = vpop.f32.mrb[34].mxu1  ;;  %v3684_v37 = vpop.f32.mrb[35].mxu0 }
 0x3c2   :  { %3959 = vst [vmem:[#allocation14] sm:$0xff] %v4489_v18  ;;  %v4491_v35 = vpack.c.bf16 %v3684_v37, %v3682_v36  ;;  %v3830_v28 = vpop.f32.mrb[35].mxu1 }
 0x3c3   :  { %3960 = vst [vmem:[#allocation14 + $0x8] sm:$0xff] %v4490_v31  ;;  %v4492_v5 = vpack.c.bf16 %v3830_v28, %v3828_v15 }
 0x3c4   :  { %3961 = vst [vmem:[#allocation14 + $0x10] sm:$0xff] %v4491_v35 }
 0x3c5   :  { %3962 = vst [vmem:[#allocation14 + $0x18] sm:$0xff] %v4492_v5 }
 0x3c6   :  { %v3688_v55 = vpop.f32.mrb[36].mxu0 }
 0x3c7   :  { %v3834_v57 = vpop.f32.mrb[36].mxu1  ;;  %v3690_v29 = vpop.f32.mrb[37].mxu0 }
 0x3c8   :  { %v4493_v54 = vpack.c.bf16 %v3690_v29, %v3688_v55  ;;  %v3836_v49 = vpop.f32.mrb[37].mxu1  ;;  %v3692_v56 = vpop.f32.mrb[38].mxu0 }
 0x3c9   :  { %v4494_v60 = vpack.c.bf16 %v3836_v49, %v3834_v57  ;;  %v3838_v9 = vpop.f32.mrb[38].mxu1  ;;  %v3694_v30 = vpop.f32.mrb[39].mxu0 }
 0x3ca   :  { %3963 = vst [vmem:[#allocation14 + $0x20] sm:$0xff] %v4493_v54  ;;  %v4495_v41 = vpack.c.bf16 %v3694_v30, %v3692_v56  ;;  %v3840_v43 = vpop.f32.mrb[39].mxu1 }
 0x3cb   :  { %3964 = vst [vmem:[#allocation14 + $0x28] sm:$0xff] %v4494_v60  ;;  %v4496_v0 = vpack.c.bf16 %v3840_v43, %v3838_v9 }
 0x3cc   :  { %3965 = vst [vmem:[#allocation14 + $0x30] sm:$0xff] %v4495_v41 }
 0x3cd   :  { %3966 = vst [vmem:[#allocation14 + $0x38] sm:$0xff] %v4496_v0 }
 0x3ce   :  { %v3698_v34 = vpop.f32.mrb[40].mxu0 }
 0x3cf   :  { %v3844_v39 = vpop.f32.mrb[40].mxu1  ;;  %v3700_v38 = vpop.f32.mrb[41].mxu0 }
 0x3d0   :  { %v4497_v22 = vpack.c.bf16 %v3700_v38, %v3698_v34  ;;  %v3846_v13 = vpop.f32.mrb[41].mxu1  ;;  %v3702_v58 = vpop.f32.mrb[42].mxu0 }
 0x3d1   :  { %v4498_v23 = vpack.c.bf16 %v3846_v13, %v3844_v39  ;;  %v3848_v42 = vpop.f32.mrb[42].mxu1  ;;  %v3704_v51 = vpop.f32.mrb[43].mxu0 }
 0x3d2   :  { %3967 = vst [vmem:[#allocation14 + $0x40] sm:$0xff] %v4497_v22  ;;  %v4499_v11 = vpack.c.bf16 %v3704_v51, %v3702_v58  ;;  %v3850_v21 = vpop.f32.mrb[43].mxu1 }
 0x3d3   :  { %3968 = vst [vmem:[#allocation14 + $0x48] sm:$0xff] %v4498_v23  ;;  %v4500_v33 = vpack.c.bf16 %v3850_v21, %v3848_v42 }
 0x3d4   :  { %3969 = vst [vmem:[#allocation14 + $0x50] sm:$0xff] %v4499_v11 }
 0x3d5   :  { %3970 = vst [vmem:[#allocation14 + $0x58] sm:$0xff] %v4500_v33 }
 0x3d6   :  { %v3708_v20 = vpop.f32.mrb[44].mxu0 }
 0x3d7   :  { %v3854_v4 = vpop.f32.mrb[44].mxu1  ;;  %v3710_v16 = vpop.f32.mrb[45].mxu0 }
 0x3d8   :  { %v4501_v45 = vpack.c.bf16 %v3710_v16, %v3708_v20  ;;  %v3856_v25 = vpop.f32.mrb[45].mxu1  ;;  %v3712_v53 = vpop.f32.mrb[46].mxu0 }
 0x3d9   :  { %v4502_v10 = vpack.c.bf16 %v3856_v25, %v3854_v4  ;;  %v3858_v24 = vpop.f32.mrb[46].mxu1  ;;  %v3714_v44 = vpop.f32.mrb[47].mxu0 }
 0x3da   :  { %3971 = vst [vmem:[#allocation14 + $0x60] sm:$0xff] %v4501_v45  ;;  %v4503_v59 = vpack.c.bf16 %v3714_v44, %v3712_v53  ;;  %v3860_v3 = vpop.f32.mrb[47].mxu1 }
 0x3db   :  { %3972 = vst [vmem:[#allocation14 + $0x68] sm:$0xff] %v4502_v10  ;;  %v4504_v32 = vpack.c.bf16 %v3860_v3, %v3858_v24 }
 0x3dc   :  { %3973 = vst [vmem:[#allocation14 + $0x70] sm:$0xff] %v4503_v59 }
 0x3dd   :  { %3974 = vst [vmem:[#allocation14 + $0x78] sm:$0xff] %v4504_v32 }
 0x3de   :  { %5402 = shalt.err (!%p5399_p4)
}
 0x3df   :  { %s5403_s23 = scalar_lea.hbm %s6043_s8, 2048 }
 0x3e0   :  { %p5404_p5 = scmp.ne.s32.totalorder %s6043_s8, %s5403_s23  ;;  %p5407_p6 = scmp.lt.u32.totalorder %s5403_s23, %s6043_s8 }
 0x3e2   :  { %p5409_p7 = pnand %p5407_p6, %p5404_p5 }
 0x3e4   :  { %5412 = shalt.err (!%p5409_p7)
}
 0x3e5   :  { %4010 = dma.vmem_to_hbm [thread:$0]  %s4005_s21, 2048, %s6043_s8, [#allocation13], %s5426_s28, %s5426_s28, %s5427_s29  }
 0x3e6   :  { %5419 = dma.done.wait [#allocation4], 2048  }
 0x3e7   :  { %5420 = vsyncadd [#allocation4], 4294965248 }
 0x3e8   :  { %5421 = dma.done.wait [#allocation13], 4096  }
 0x3e9   :  { %5422 = vsyncadd [#allocation13], 4294963200 }
 0x3ea   :  { %4020 = vsyncpa [#allocation3], 1 }
 0x3eb   :  { %4021 = vsyncpa [#allocation6], 1 }
 0x3ec   :  { %4022 = vsyncpa [#allocation9], 1 }
 0x3ed   :  { %4023 = vsyncpa [#allocation4], 1 }
 0x3ee   :  { %4024 = vsyncpa [#allocation13], 1 }

</bundles_post_ra>
